<compile_context>
chip_gen: v7x
topology: tpu7x:2x2x1
jax: 0.10.0
libtpu: 0.0.40
codegen_flags: <defaults>
</compile_context>

<pallas_src>
import functools

import jax
import jax.numpy as jnp
from jax import lax
from jax.experimental import pallas as pl
from jax.experimental.pallas import tpu as pltpu


# ---------------------------------------------------------------------------
# Fused Pallas kernel: conv (im2col matmul) + ReLU + fc1 + ReLU + fc2
# ---------------------------------------------------------------------------

def _fused_simclr_kernel(pt_ref, wc_ref, bc_ref, w1_ref, b1_ref, w2_ref, b2_ref,
                         o_ref, *, tb, hw, c_out):
    # Conv as a lane-dense matmul: (C_out, K) @ (K, TB*HW) -> (C_out, TB*HW).
    conv = jnp.dot(wc_ref[...], pt_ref[...], preferred_element_type=jnp.float32)
    conv = jnp.maximum(conv + bc_ref[...], 0.0)

    rows = []
    for t in range(tb):                          # static unroll over samples in tile
        # (C_out, HW) slice == torch flatten order (c, h, w) for this sample.
        feat = conv[:, t * hw:(t + 1) * hw]
        # fc1 without any in-kernel reshape: sum_c feat[c, :] @ W1r[c, :, :]
        h1 = b1_ref[...]                         # (1, hidden)
        for c in range(c_out):
            h1 = h1 + jnp.dot(feat[c:c + 1, :], w1_ref[c],
                              preferred_element_type=jnp.float32)
        h1 = jnp.maximum(h1, 0.0)
        out_t = jnp.dot(h1, w2_ref[...], preferred_element_type=jnp.float32)
        rows.append(out_t + b2_ref[...])         # (1, P)

    o_ref[0] = jnp.concatenate(rows, axis=0).astype(o_ref.dtype)  # (TB, P)


# ---------------------------------------------------------------------------
# Trace-time glue (im2col in transposed (K, M) layout, weight reshuffles)
# ---------------------------------------------------------------------------

def _im2col_t(x, kh=3, kw=3, pad=1):
    """x: (N, C, H, W) -> (C*kh*kw, N*H*W), k ordered (c, i, j), m ordered (n, h, w)."""
    N, C, H, W = x.shape
    xp = jnp.pad(x, ((0, 0), (0, 0), (pad, pad), (pad, pad)))
    shifts = [xp[:, :, i:i + H, j:j + W] for i in range(kh) for j in range(kw)]
    p = jnp.stack(shifts, axis=0)                # (kh*kw, N, C, H, W)
    p = jnp.transpose(p, (2, 0, 1, 3, 4))        # (C, kh*kw, N, H, W)
    return p.reshape(C * kh * kw, N * H * W)


def simclr_forward(x, x_positive, params, *, tb=2):
    """Faithful port of SimCLR.forward(x, x_positive) -> (queries, keys)."""
    B, C, H, W = x.shape
    conv_w, conv_b = params["conv_w"], params["conv_b"]
    fc1_w, fc1_b = params["fc1_w"], params["fc1_b"]
    fc2_w, fc2_b = params["fc2_w"], params["fc2_b"]
    C_out = conv_w.shape[0]
    HW = H * W
    hidden = fc1_w.shape[0]
    P = fc2_w.shape[0]

    # Batch both branches; keys path is gradient-free (torch.no_grad/detach).
    x_all = jnp.concatenate([x, lax.stop_gradient(x_positive)], axis=0)
    N = 2 * B
    if N % tb != 0:
        tb = 1
    n_tiles = N // tb
    m_tile = tb * HW

    # Trace-time prep (one-time weight reshuffles, zero per-step runtime cost).
    patches_t = _im2col_t(x_all)                       # (K, N*HW)
    K = patches_t.shape[0]                             # C * 9
    wc = conv_w.reshape(C_out, K)                      # (C_out, K)
    bc = conv_b.reshape(C_out, 1)                      # (C_out, 1)
    w1r = fc1_w.T.reshape(C_out, HW, hidden)           # [c, m, hid] == fc1_w[hid, c*HW+m]
    b1 = fc1_b.reshape(1, hidden)
    w2 = fc2_w.T                                       # (hidden, P)
    b2 = fc2_b.reshape(1, P)

    flops = (2 * C_out * K * (N * HW)                  # conv
             + 2 * N * (C_out * HW) * hidden           # fc1
             + 2 * N * hidden * P)                     # fc2
    bytes_accessed = 4 * (patches_t.size + wc.size + bc.size + w1r.size
                          + b1.size + w2.size + b2.size + N * P)

    kernel = functools.partial(_fused_simclr_kernel, tb=tb, hw=HW, c_out=C_out)

    out = pl.pallas_call(
        kernel,
        out_shape=jax.ShapeDtypeStruct((n_tiles, tb, P), jnp.float32),
        grid=(n_tiles,),
        in_specs=[
            pl.BlockSpec((K, m_tile), lambda t: (0, t)),          # patch tile (lane-dense M)
            pl.BlockSpec((C_out, K), lambda t: (0, 0)),           # conv weight (untiled)
            pl.BlockSpec((C_out, 1), lambda t: (0, 0)),           # conv bias
            pl.BlockSpec((C_out, HW, hidden), lambda t: (0, 0, 0)),  # fc1 weight (untiled)
            pl.BlockSpec((1, hidden), lambda t: (0, 0)),          # fc1 bias
            pl.BlockSpec((hidden, P), lambda t: (0, 0)),          # fc2 weight
            pl.BlockSpec((1, P), lambda t: (0, 0)),               # fc2 bias
        ],
        out_specs=pl.BlockSpec((1, tb, P), lambda t: (t, 0, 0)),
        compiler_params=pltpu.CompilerParams(
            dimension_semantics=("parallel",)),
        cost_estimate=pl.CostEstimate(
            flops=flops, transcendentals=0, bytes_accessed=bytes_accessed),
    )(patches_t, wc, bc, w1r, b1, w2, b2)

    out = out.reshape(N, P)
    queries = out[:B]
    keys = lax.stop_gradient(out[B:])                  # mirrors torch.no_grad()/detach()
    return queries, keys


# ---------------------------------------------------------------------------
# Deterministic params + demo / self-check
# ---------------------------------------------------------------------------

def init_params(key, c_in=4, c_out=8, h=16, w=16, hidden=32, proj_dim=16):
    d_flat = c_out * h * w
    k = jax.random.split(key, 6)
    return {
        "conv_w": 0.05 * jax.random.normal(k[0], (c_out, c_in, 3, 3), jnp.float32),
        "conv_b": 0.05 * jax.random.normal(k[1], (c_out,), jnp.float32),
        "fc1_w": 0.02 * jax.random.normal(k[2], (hidden, d_flat), jnp.float32),
        "fc1_b": 0.02 * jax.random.normal(k[3], (hidden,), jnp.float32),
        "fc2_w": 0.1 * jax.random.normal(k[4], (proj_dim, hidden), jnp.float32),
        "fc2_b": 0.1 * jax.random.normal(k[5], (proj_dim,), jnp.float32),
    }


def _reference_branch(x_in, params):
    """Pure-JAX reference of encoder -> flatten -> projector (one branch)."""
    y = lax.conv_general_dilated(
        x_in, params["conv_w"], window_strides=(1, 1),
        padding=((1, 1), (1, 1)),
        dimension_numbers=("NCHW", "OIHW", "NCHW"))
    y = jnp.maximum(y + params["conv_b"][None, :, None, None], 0.0)
    f = y.reshape(y.shape[0], -1)
    h = jnp.maximum(f @ params["fc1_w"].T + params["fc1_b"], 0.0)
    return h @ params["fc2_w"].T + params["fc2_b"]


if __name__ == "__main__":
    key = jax.random.PRNGKey(0)
    k_params, k_x, k_xp = jax.random.split(key, 3)

    B, C, H, W = 2, 4, 16, 16
    params = init_params(k_params, c_in=C, h=H, w=W)

    x = jax.random.normal(k_x, (B, C, H, W), jnp.float32)
    x_positive = jax.random.normal(k_xp, (B, C, H, W), jnp.float32)

    queries, keys = jax.jit(simclr_forward)(x, x_positive, params)
    jax.block_until_ready((queries, keys))

    assert queries.shape == (B, 16) and keys.shape == (B, 16)

    # Numerical sanity check against a pure-JAX reference (generous tolerance).
    q_ref = _reference_branch(x, params)
    k_ref = _reference_branch(x_positive, params)
    assert bool(jnp.allclose(queries, q_ref, rtol=2e-3, atol=2e-3))
    assert bool(jnp.allclose(keys, k_ref, rtol=2e-3, atol=2e-3))

    print("KERNEL_OK")
</pallas_src>

<mosaic_0001>
module attributes {stable_mosaic.version = 11 : i64} {
  func.func @_fused_simclr_kernel(%arg0: i32, %arg1: memref<36x512xf32, #tpu.memory_space<vmem>>, %arg2: memref<8x36xf32, #tpu.memory_space<vmem>>, %arg3: memref<8x1xf32, #tpu.memory_space<vmem>>, %arg4: memref<8x256x32xf32, #tpu.memory_space<vmem>>, %arg5: memref<1x32xf32, #tpu.memory_space<vmem>>, %arg6: memref<32x16xf32, #tpu.memory_space<vmem>>, %arg7: memref<1x16xf32, #tpu.memory_space<vmem>>, %arg8: memref<1x2x16xf32, #tpu.memory_space<vmem>>) attributes {dimension_semantics = [#tpu.dimension_semantics<parallel>], iteration_bounds = array<i64: 2>, scalar_prefetch = 0 : i64, scratch_operands = 0 : i64, tpu.core_type = #tpu.core_type<tc>, window_params = [{transform_indices = @transform_0, window_bounds = array<i64: 36, 512>}, {pipeline_mode = #tpu.pipeline_mode<synchronous>, transform_indices = @transform_1, window_bounds = array<i64: 8, 36>}, {pipeline_mode = #tpu.pipeline_mode<synchronous>, transform_indices = @transform_2, window_bounds = array<i64: 8, 1>}, {pipeline_mode = #tpu.pipeline_mode<synchronous>, transform_indices = @transform_3, window_bounds = array<i64: 8, 256, 32>}, {pipeline_mode = #tpu.pipeline_mode<synchronous>, transform_indices = @transform_4, window_bounds = array<i64: 1, 32>}, {pipeline_mode = #tpu.pipeline_mode<synchronous>, transform_indices = @transform_5, window_bounds = array<i64: 32, 16>}, {pipeline_mode = #tpu.pipeline_mode<synchronous>, transform_indices = @transform_6, window_bounds = array<i64: 1, 16>}, {transform_indices = @transform_7, window_bounds = array<i64: 1, 2, 16>}]} {
    %c0 = arith.constant 0 : index
    %c0_0 = arith.constant 0 : index
    %0 = vector.load %arg2[%c0, %c0_0] : memref<8x36xf32, #tpu.memory_space<vmem>>, vector<8x36xf32>
    %c0_1 = arith.constant 0 : index
    %c0_2 = arith.constant 0 : index
    %1 = vector.load %arg1[%c0_1, %c0_2] : memref<36x512xf32, #tpu.memory_space<vmem>>, vector<36x512xf32>
    %cst = arith.constant dense<0.000000e+00> : vector<8x512xf32>
    %2 = tpu.matmul %0, %1, %cst {dimension_numbers = #tpu.dot_dimension_numbers<[1], [0], [0], [1], [0, 0, 1, 1], [], []>} : vector<8x36xf32>, vector<36x512xf32>, vector<8x512xf32> -> vector<8x512xf32>
    %c0_3 = arith.constant 0 : index
    %c0_4 = arith.constant 0 : index
    %3 = vector.load %arg3[%c0_3, %c0_4] : memref<8x1xf32, #tpu.memory_space<vmem>>, vector<8x1xf32>
    %4 = vector.broadcast %3 : vector<8x1xf32> to vector<8x512xf32>
    %5 = arith.addf %2, %4 : vector<8x512xf32>
    %cst_5 = arith.constant 0.000000e+00 : f32
    %6 = vector.broadcast %cst_5 : f32 to vector<8x512xf32>
    %7 = arith.maximumf %5, %6 : vector<8x512xf32>
    %8 = vector.extract_strided_slice %7 {offsets = [0, 0], sizes = [8, 256], strides = [1, 1]} : vector<8x512xf32> to vector<8x256xf32>
    %c0_6 = arith.constant 0 : index
    %c0_7 = arith.constant 0 : index
    %9 = vector.load %arg5[%c0_6, %c0_7] : memref<1x32xf32, #tpu.memory_space<vmem>>, vector<1x32xf32>
    %10 = vector.extract_strided_slice %8 {offsets = [0, 0], sizes = [1, 256], strides = [1, 1]} : vector<8x256xf32> to vector<1x256xf32>
    %c0_8 = arith.constant 0 : index
    %c0_9 = arith.constant 0 : index
    %c0_10 = arith.constant 0 : index
    %11 = vector.load %arg4[%c0_8, %c0_9, %c0_10] : memref<8x256x32xf32, #tpu.memory_space<vmem>>, vector<1x256x32xf32>
    %12 = vector.shape_cast %11 : vector<1x256x32xf32> to vector<256x32xf32>
    %cst_11 = arith.constant dense<0.000000e+00> : vector<1x32xf32>
    %13 = tpu.matmul %10, %12, %cst_11 {dimension_numbers = #tpu.dot_dimension_numbers<[1], [0], [0], [1], [0, 0, 1, 1], [], []>} : vector<1x256xf32>, vector<256x32xf32>, vector<1x32xf32> -> vector<1x32xf32>
    %14 = arith.addf %9, %13 : vector<1x32xf32>
    %15 = vector.extract_strided_slice %8 {offsets = [1, 0], sizes = [1, 256], strides = [1, 1]} : vector<8x256xf32> to vector<1x256xf32>
    %c1 = arith.constant 1 : index
    %c0_12 = arith.constant 0 : index
    %c0_13 = arith.constant 0 : index
    %16 = vector.load %arg4[%c1, %c0_12, %c0_13] : memref<8x256x32xf32, #tpu.memory_space<vmem>>, vector<1x256x32xf32>
    %17 = vector.shape_cast %16 : vector<1x256x32xf32> to vector<256x32xf32>
    %cst_14 = arith.constant dense<0.000000e+00> : vector<1x32xf32>
    %18 = tpu.matmul %15, %17, %cst_14 {dimension_numbers = #tpu.dot_dimension_numbers<[1], [0], [0], [1], [0, 0, 1, 1], [], []>} : vector<1x256xf32>, vector<256x32xf32>, vector<1x32xf32> -> vector<1x32xf32>
    %19 = arith.addf %14, %18 : vector<1x32xf32>
    %20 = vector.extract_strided_slice %8 {offsets = [2, 0], sizes = [1, 256], strides = [1, 1]} : vector<8x256xf32> to vector<1x256xf32>
    %c2 = arith.constant 2 : index
    %c0_15 = arith.constant 0 : index
    %c0_16 = arith.constant 0 : index
    %21 = vector.load %arg4[%c2, %c0_15, %c0_16] : memref<8x256x32xf32, #tpu.memory_space<vmem>>, vector<1x256x32xf32>
    %22 = vector.shape_cast %21 : vector<1x256x32xf32> to vector<256x32xf32>
    %cst_17 = arith.constant dense<0.000000e+00> : vector<1x32xf32>
    %23 = tpu.matmul %20, %22, %cst_17 {dimension_numbers = #tpu.dot_dimension_numbers<[1], [0], [0], [1], [0, 0, 1, 1], [], []>} : vector<1x256xf32>, vector<256x32xf32>, vector<1x32xf32> -> vector<1x32xf32>
    %24 = arith.addf %19, %23 : vector<1x32xf32>
    %25 = vector.extract_strided_slice %8 {offsets = [3, 0], sizes = [1, 256], strides = [1, 1]} : vector<8x256xf32> to vector<1x256xf32>
    %c3 = arith.constant 3 : index
    %c0_18 = arith.constant 0 : index
    %c0_19 = arith.constant 0 : index
    %26 = vector.load %arg4[%c3, %c0_18, %c0_19] : memref<8x256x32xf32, #tpu.memory_space<vmem>>, vector<1x256x32xf32>
    %27 = vector.shape_cast %26 : vector<1x256x32xf32> to vector<256x32xf32>
    %cst_20 = arith.constant dense<0.000000e+00> : vector<1x32xf32>
    %28 = tpu.matmul %25, %27, %cst_20 {dimension_numbers = #tpu.dot_dimension_numbers<[1], [0], [0], [1], [0, 0, 1, 1], [], []>} : vector<1x256xf32>, vector<256x32xf32>, vector<1x32xf32> -> vector<1x32xf32>
    %29 = arith.addf %24, %28 : vector<1x32xf32>
    %30 = vector.extract_strided_slice %8 {offsets = [4, 0], sizes = [1, 256], strides = [1, 1]} : vector<8x256xf32> to vector<1x256xf32>
    %c4 = arith.constant 4 : index
    %c0_21 = arith.constant 0 : index
    %c0_22 = arith.constant 0 : index
    %31 = vector.load %arg4[%c4, %c0_21, %c0_22] : memref<8x256x32xf32, #tpu.memory_space<vmem>>, vector<1x256x32xf32>
    %32 = vector.shape_cast %31 : vector<1x256x32xf32> to vector<256x32xf32>
    %cst_23 = arith.constant dense<0.000000e+00> : vector<1x32xf32>
    %33 = tpu.matmul %30, %32, %cst_23 {dimension_numbers = #tpu.dot_dimension_numbers<[1], [0], [0], [1], [0, 0, 1, 1], [], []>} : vector<1x256xf32>, vector<256x32xf32>, vector<1x32xf32> -> vector<1x32xf32>
    %34 = arith.addf %29, %33 : vector<1x32xf32>
    %35 = vector.extract_strided_slice %8 {offsets = [5, 0], sizes = [1, 256], strides = [1, 1]} : vector<8x256xf32> to vector<1x256xf32>
    %c5 = arith.constant 5 : index
    %c0_24 = arith.constant 0 : index
    %c0_25 = arith.constant 0 : index
    %36 = vector.load %arg4[%c5, %c0_24, %c0_25] : memref<8x256x32xf32, #tpu.memory_space<vmem>>, vector<1x256x32xf32>
    %37 = vector.shape_cast %36 : vector<1x256x32xf32> to vector<256x32xf32>
    %cst_26 = arith.constant dense<0.000000e+00> : vector<1x32xf32>
    %38 = tpu.matmul %35, %37, %cst_26 {dimension_numbers = #tpu.dot_dimension_numbers<[1], [0], [0], [1], [0, 0, 1, 1], [], []>} : vector<1x256xf32>, vector<256x32xf32>, vector<1x32xf32> -> vector<1x32xf32>
    %39 = arith.addf %34, %38 : vector<1x32xf32>
    %40 = vector.extract_strided_slice %8 {offsets = [6, 0], sizes = [1, 256], strides = [1, 1]} : vector<8x256xf32> to vector<1x256xf32>
    %c6 = arith.constant 6 : index
    %c0_27 = arith.constant 0 : index
    %c0_28 = arith.constant 0 : index
    %41 = vector.load %arg4[%c6, %c0_27, %c0_28] : memref<8x256x32xf32, #tpu.memory_space<vmem>>, vector<1x256x32xf32>
    %42 = vector.shape_cast %41 : vector<1x256x32xf32> to vector<256x32xf32>
    %cst_29 = arith.constant dense<0.000000e+00> : vector<1x32xf32>
    %43 = tpu.matmul %40, %42, %cst_29 {dimension_numbers = #tpu.dot_dimension_numbers<[1], [0], [0], [1], [0, 0, 1, 1], [], []>} : vector<1x256xf32>, vector<256x32xf32>, vector<1x32xf32> -> vector<1x32xf32>
    %44 = arith.addf %39, %43 : vector<1x32xf32>
    %45 = vector.extract_strided_slice %8 {offsets = [7, 0], sizes = [1, 256], strides = [1, 1]} : vector<8x256xf32> to vector<1x256xf32>
    %c7 = arith.constant 7 : index
    %c0_30 = arith.constant 0 : index
    %c0_31 = arith.constant 0 : index
    %46 = vector.load %arg4[%c7, %c0_30, %c0_31] : memref<8x256x32xf32, #tpu.memory_space<vmem>>, vector<1x256x32xf32>
    %47 = vector.shape_cast %46 : vector<1x256x32xf32> to vector<256x32xf32>
    %cst_32 = arith.constant dense<0.000000e+00> : vector<1x32xf32>
    %48 = tpu.matmul %45, %47, %cst_32 {dimension_numbers = #tpu.dot_dimension_numbers<[1], [0], [0], [1], [0, 0, 1, 1], [], []>} : vector<1x256xf32>, vector<256x32xf32>, vector<1x32xf32> -> vector<1x32xf32>
    %49 = arith.addf %44, %48 : vector<1x32xf32>
    %cst_33 = arith.constant 0.000000e+00 : f32
    %50 = vector.broadcast %cst_33 : f32 to vector<1x32xf32>
    %51 = arith.maximumf %49, %50 : vector<1x32xf32>
    %c0_34 = arith.constant 0 : index
    %c0_35 = arith.constant 0 : index
    %52 = vector.load %arg6[%c0_34, %c0_35] : memref<32x16xf32, #tpu.memory_space<vmem>>, vector<32x16xf32>
    %cst_36 = arith.constant dense<0.000000e+00> : vector<1x16xf32>
    %53 = tpu.matmul %51, %52, %cst_36 {dimension_numbers = #tpu.dot_dimension_numbers<[1], [0], [0], [1], [0, 0, 1, 1], [], []>} : vector<1x32xf32>, vector<32x16xf32>, vector<1x16xf32> -> vector<1x16xf32>
    %c0_37 = arith.constant 0 : index
    %c0_38 = arith.constant 0 : index
    %54 = vector.load %arg7[%c0_37, %c0_38] : memref<1x16xf32, #tpu.memory_space<vmem>>, vector<1x16xf32>
    %55 = arith.addf %53, %54 : vector<1x16xf32>
    %56 = vector.extract_strided_slice %7 {offsets = [0, 256], sizes = [8, 256], strides = [1, 1]} : vector<8x512xf32> to vector<8x256xf32>
    %c0_39 = arith.constant 0 : index
    %c0_40 = arith.constant 0 : index
    %57 = vector.load %arg5[%c0_39, %c0_40] : memref<1x32xf32, #tpu.memory_space<vmem>>, vector<1x32xf32>
    %58 = vector.extract_strided_slice %56 {offsets = [0, 0], sizes = [1, 256], strides = [1, 1]} : vector<8x256xf32> to vector<1x256xf32>
    %c0_41 = arith.constant 0 : index
    %c0_42 = arith.constant 0 : index
    %c0_43 = arith.constant 0 : index
    %59 = vector.load %arg4[%c0_41, %c0_42, %c0_43] : memref<8x256x32xf32, #tpu.memory_space<vmem>>, vector<1x256x32xf32>
    %60 = vector.shape_cast %59 : vector<1x256x32xf32> to vector<256x32xf32>
    %cst_44 = arith.constant dense<0.000000e+00> : vector<1x32xf32>
    %61 = tpu.matmul %58, %60, %cst_44 {dimension_numbers = #tpu.dot_dimension_numbers<[1], [0], [0], [1], [0, 0, 1, 1], [], []>} : vector<1x256xf32>, vector<256x32xf32>, vector<1x32xf32> -> vector<1x32xf32>
    %62 = arith.addf %57, %61 : vector<1x32xf32>
    %63 = vector.extract_strided_slice %56 {offsets = [1, 0], sizes = [1, 256], strides = [1, 1]} : vector<8x256xf32> to vector<1x256xf32>
    %c1_45 = arith.constant 1 : index
    %c0_46 = arith.constant 0 : index
    %c0_47 = arith.constant 0 : index
    %64 = vector.load %arg4[%c1_45, %c0_46, %c0_47] : memref<8x256x32xf32, #tpu.memory_space<vmem>>, vector<1x256x32xf32>
    %65 = vector.shape_cast %64 : vector<1x256x32xf32> to vector<256x32xf32>
    %cst_48 = arith.constant dense<0.000000e+00> : vector<1x32xf32>
    %66 = tpu.matmul %63, %65, %cst_48 {dimension_numbers = #tpu.dot_dimension_numbers<[1], [0], [0], [1], [0, 0, 1, 1], [], []>} : vector<1x256xf32>, vector<256x32xf32>, vector<1x32xf32> -> vector<1x32xf32>
    %67 = arith.addf %62, %66 : vector<1x32xf32>
    %68 = vector.extract_strided_slice %56 {offsets = [2, 0], sizes = [1, 256], strides = [1, 1]} : vector<8x256xf32> to vector<1x256xf32>
    %c2_49 = arith.constant 2 : index
    %c0_50 = arith.constant 0 : index
    %c0_51 = arith.constant 0 : index
    %69 = vector.load %arg4[%c2_49, %c0_50, %c0_51] : memref<8x256x32xf32, #tpu.memory_space<vmem>>, vector<1x256x32xf32>
    %70 = vector.shape_cast %69 : vector<1x256x32xf32> to vector<256x32xf32>
    %cst_52 = arith.constant dense<0.000000e+00> : vector<1x32xf32>
    %71 = tpu.matmul %68, %70, %cst_52 {dimension_numbers = #tpu.dot_dimension_numbers<[1], [0], [0], [1], [0, 0, 1, 1], [], []>} : vector<1x256xf32>, vector<256x32xf32>, vector<1x32xf32> -> vector<1x32xf32>
    %72 = arith.addf %67, %71 : vector<1x32xf32>
    %73 = vector.extract_strided_slice %56 {offsets = [3, 0], sizes = [1, 256], strides = [1, 1]} : vector<8x256xf32> to vector<1x256xf32>
    %c3_53 = arith.constant 3 : index
    %c0_54 = arith.constant 0 : index
    %c0_55 = arith.constant 0 : index
    %74 = vector.load %arg4[%c3_53, %c0_54, %c0_55] : memref<8x256x32xf32, #tpu.memory_space<vmem>>, vector<1x256x32xf32>
    %75 = vector.shape_cast %74 : vector<1x256x32xf32> to vector<256x32xf32>
    %cst_56 = arith.constant dense<0.000000e+00> : vector<1x32xf32>
    %76 = tpu.matmul %73, %75, %cst_56 {dimension_numbers = #tpu.dot_dimension_numbers<[1], [0], [0], [1], [0, 0, 1, 1], [], []>} : vector<1x256xf32>, vector<256x32xf32>, vector<1x32xf32> -> vector<1x32xf32>
    %77 = arith.addf %72, %76 : vector<1x32xf32>
    %78 = vector.extract_strided_slice %56 {offsets = [4, 0], sizes = [1, 256], strides = [1, 1]} : vector<8x256xf32> to vector<1x256xf32>
    %c4_57 = arith.constant 4 : index
    %c0_58 = arith.constant 0 : index
    %c0_59 = arith.constant 0 : index
    %79 = vector.load %arg4[%c4_57, %c0_58, %c0_59] : memref<8x256x32xf32, #tpu.memory_space<vmem>>, vector<1x256x32xf32>
    %80 = vector.shape_cast %79 : vector<1x256x32xf32> to vector<256x32xf32>
    %cst_60 = arith.constant dense<0.000000e+00> : vector<1x32xf32>
    %81 = tpu.matmul %78, %80, %cst_60 {dimension_numbers = #tpu.dot_dimension_numbers<[1], [0], [0], [1], [0, 0, 1, 1], [], []>} : vector<1x256xf32>, vector<256x32xf32>, vector<1x32xf32> -> vector<1x32xf32>
    %82 = arith.addf %77, %81 : vector<1x32xf32>
    %83 = vector.extract_strided_slice %56 {offsets = [5, 0], sizes = [1, 256], strides = [1, 1]} : vector<8x256xf32> to vector<1x256xf32>
    %c5_61 = arith.constant 5 : index
    %c0_62 = arith.constant 0 : index
    %c0_63 = arith.constant 0 : index
    %84 = vector.load %arg4[%c5_61, %c0_62, %c0_63] : memref<8x256x32xf32, #tpu.memory_space<vmem>>, vector<1x256x32xf32>
    %85 = vector.shape_cast %84 : vector<1x256x32xf32> to vector<256x32xf32>
    %cst_64 = arith.constant dense<0.000000e+00> : vector<1x32xf32>
    %86 = tpu.matmul %83, %85, %cst_64 {dimension_numbers = #tpu.dot_dimension_numbers<[1], [0], [0], [1], [0, 0, 1, 1], [], []>} : vector<1x256xf32>, vector<256x32xf32>, vector<1x32xf32> -> vector<1x32xf32>
    %87 = arith.addf %82, %86 : vector<1x32xf32>
    %88 = vector.extract_strided_slice %56 {offsets = [6, 0], sizes = [1, 256], strides = [1, 1]} : vector<8x256xf32> to vector<1x256xf32>
    %c6_65 = arith.constant 6 : index
    %c0_66 = arith.constant 0 : index
    %c0_67 = arith.constant 0 : index
    %89 = vector.load %arg4[%c6_65, %c0_66, %c0_67] : memref<8x256x32xf32, #tpu.memory_space<vmem>>, vector<1x256x32xf32>
    %90 = vector.shape_cast %89 : vector<1x256x32xf32> to vector<256x32xf32>
    %cst_68 = arith.constant dense<0.000000e+00> : vector<1x32xf32>
    %91 = tpu.matmul %88, %90, %cst_68 {dimension_numbers = #tpu.dot_dimension_numbers<[1], [0], [0], [1], [0, 0, 1, 1], [], []>} : vector<1x256xf32>, vector<256x32xf32>, vector<1x32xf32> -> vector<1x32xf32>
    %92 = arith.addf %87, %91 : vector<1x32xf32>
    %93 = vector.extract_strided_slice %56 {offsets = [7, 0], sizes = [1, 256], strides = [1, 1]} : vector<8x256xf32> to vector<1x256xf32>
    %c7_69 = arith.constant 7 : index
    %c0_70 = arith.constant 0 : index
    %c0_71 = arith.constant 0 : index
    %94 = vector.load %arg4[%c7_69, %c0_70, %c0_71] : memref<8x256x32xf32, #tpu.memory_space<vmem>>, vector<1x256x32xf32>
    %95 = vector.shape_cast %94 : vector<1x256x32xf32> to vector<256x32xf32>
    %cst_72 = arith.constant dense<0.000000e+00> : vector<1x32xf32>
    %96 = tpu.matmul %93, %95, %cst_72 {dimension_numbers = #tpu.dot_dimension_numbers<[1], [0], [0], [1], [0, 0, 1, 1], [], []>} : vector<1x256xf32>, vector<256x32xf32>, vector<1x32xf32> -> vector<1x32xf32>
    %97 = arith.addf %92, %96 : vector<1x32xf32>
    %cst_73 = arith.constant 0.000000e+00 : f32
    %98 = vector.broadcast %cst_73 : f32 to vector<1x32xf32>
    %99 = arith.maximumf %97, %98 : vector<1x32xf32>
    %c0_74 = arith.constant 0 : index
    %c0_75 = arith.constant 0 : index
    %100 = vector.load %arg6[%c0_74, %c0_75] : memref<32x16xf32, #tpu.memory_space<vmem>>, vector<32x16xf32>
    %cst_76 = arith.constant dense<0.000000e+00> : vector<1x16xf32>
    %101 = tpu.matmul %99, %100, %cst_76 {dimension_numbers = #tpu.dot_dimension_numbers<[1], [0], [0], [1], [0, 0, 1, 1], [], []>} : vector<1x32xf32>, vector<32x16xf32>, vector<1x16xf32> -> vector<1x16xf32>
    %c0_77 = arith.constant 0 : index
    %c0_78 = arith.constant 0 : index
    %102 = vector.load %arg7[%c0_77, %c0_78] : memref<1x16xf32, #tpu.memory_space<vmem>>, vector<1x16xf32>
    %103 = arith.addf %101, %102 : vector<1x16xf32>
    %104 = tpu.concatenate %55, %103 in 0 : vector<1x16xf32>, vector<1x16xf32> -> vector<2x16xf32>
    %c0_79 = arith.constant 0 : index
    %c0_80 = arith.constant 0 : index
    %c0_81 = arith.constant 0 : index
    %105 = vector.load %arg8[%c0_79, %c0_80, %c0_81] : memref<1x2x16xf32, #tpu.memory_space<vmem>>, vector<1x2x16xf32>
    %106 = vector.shape_cast %105 : vector<1x2x16xf32> to vector<2x16xf32>
    %107 = vector.shape_cast %104 : vector<2x16xf32> to vector<1x2x16xf32>
    tpu.vector_store %arg8[%c0_79, %c0_80, %c0_81], %107 {strides = array<i32>} : memref<1x2x16xf32, #tpu.memory_space<vmem>>, vector<1x2x16xf32>,
    return
  }
  func.func @transform_0(%arg0: i32) -> (i32, i32) {
    %c0_i32 = arith.constant 0 : i32
    %c0_i32_0 = arith.constant 0 : i32
    return %c0_i32, %arg0 : i32, i32
  }
  func.func @transform_1(%arg0: i32) -> (i32, i32) {
    %c0_i32 = arith.constant 0 : i32
    %c0_i32_0 = arith.constant 0 : i32
    %c0_i32_1 = arith.constant 0 : i32
    return %c0_i32, %c0_i32_0 : i32, i32
  }
  func.func @transform_2(%arg0: i32) -> (i32, i32) {
    %c0_i32 = arith.constant 0 : i32
    %c0_i32_0 = arith.constant 0 : i32
    %c0_i32_1 = arith.constant 0 : i32
    return %c0_i32, %c0_i32_0 : i32, i32
  }
  func.func @transform_3(%arg0: i32) -> (i32, i32, i32) {
    %c0_i32 = arith.constant 0 : i32
    %c0_i32_0 = arith.constant 0 : i32
    %c0_i32_1 = arith.constant 0 : i32
    %c0_i32_2 = arith.constant 0 : i32
    return %c0_i32, %c0_i32_0, %c0_i32_1 : i32, i32, i32
  }
  func.func @transform_4(%arg0: i32) -> (i32, i32) {
    %c0_i32 = arith.constant 0 : i32
    %c0_i32_0 = arith.constant 0 : i32
    %c0_i32_1 = arith.constant 0 : i32
    return %c0_i32, %c0_i32_0 : i32, i32
  }
  func.func @transform_5(%arg0: i32) -> (i32, i32) {
    %c0_i32 = arith.constant 0 : i32
    %c0_i32_0 = arith.constant 0 : i32
    %c0_i32_1 = arith.constant 0 : i32
    return %c0_i32, %c0_i32_0 : i32, i32
  }
  func.func @transform_6(%arg0: i32) -> (i32, i32) {
    %c0_i32 = arith.constant 0 : i32
    %c0_i32_0 = arith.constant 0 : i32
    %c0_i32_1 = arith.constant 0 : i32
    return %c0_i32, %c0_i32_0 : i32, i32
  }
  func.func @transform_7(%arg0: i32) -> (i32, i32, i32) {
    %c0_i32 = arith.constant 0 : i32
    %c0_i32_0 = arith.constant 0 : i32
    %c0_i32_1 = arith.constant 0 : i32
    return %arg0, %c0_i32, %c0_i32_0 : i32, i32, i32
  }
}

</mosaic_0001>

<bundles_post_ra>
// kernel: simclr_forward.1
= control target key start
LH: loop header
LB: loop body
LE: loop exit
PB: predicated region body
PF: predicated region fallthrough
CT: control target
= control target key end

     0   :  { %s3680_s24 = smov 0   ;;  %s3682_s25 = smov 0   ;;  %s5171_s0 = inlined_call_operand.vmem [shape: f32[36,1024], index: 0, kind: input, shape index: {}]   ;;  %s5172_s1 = inlined_call_operand.vmem [shape: f32[8,36], index: 1, kind: input, shape index: {}]   ;;  %s5173_s2 = inlined_call_operand.vmem [shape: f32[8,1], index: 2, kind: input, shape index: {}]   ;;  %s5174_s3 = inlined_call_operand.vmem [shape: f32[8,256,32], index: 3, kind: input, shape index: {}]   ;;  %s5175_s4 = inlined_call_operand.vmem [shape: f32[1,32], index: 4, kind: input, shape index: {}]   ;;  %s5176_s5 = inlined_call_operand.vmem [shape: f32[32,16], index: 5, kind: input, shape index: {}]   ;;  %s5177_s6 = inlined_call_operand.vmem [shape: f32[1,16], index: 6, kind: input, shape index: {}]   ;;  %s5178_s7 = inlined_call_operand.vmem [shape: f32[2,2,16], index: 7, kind: output, shape index: {}]  }
   0x1   :  { %s3684_s26 = smov 0  }
   0x2 LB: > { %s2206_s27 = sadd.s32 4294967295, %s3634_s26   ;;  %s3697_s28 = sadd.s32 1, %s3634_s26   ;;  %s3634_s26 = sphi %s3684_s26, %s5406_s26   ;;  %s3630_s25 = sphi %s3682_s25, %s5405_s25   ;;  %s3626_s24 = sphi %s3680_s24, %s5404_s24  }
   0x3   : > { %s21_s29 = ssub.s32 %s3634_s26, %s3697_s28  ;;  %s24_s30 = sadd.s32 1, %s3630_s25 }
   0x4   : > { %p22_p0 = scmp.eq.s32.totalorder %s21_s29, 0  ;;  %p31_p1 = scmp.ne.s32.totalorder %s3630_s25, %s3626_s24 }
   0x5   : > { %p32_p2 = scmp.eq.s32.totalorder %s3634_s26, 0  ;;  %p2209_p4 = scmp.ge.s32.totalorder %s3634_s26, 2 }
   0x6   : > { %s3706_s8 = scalar_select %p22_p0, %s3630_s25, %s24_s30  }
   0x7   : > { %p33_p3 = por %p32_p2, %p31_p1  ;;  %227 = sbr.rel (%p2209_p4) target bundleno = 29 (0x1d), region = 40 }
   0xe   : > { %230 = sbr.rel (!%p33_p3) target bundleno = 29 (0x1d), region = 44  ;;  %s232_s9 = sand.u32 (%p33_p3), 1, %s3630_s25  }
   0xf   : > { %s2448_s10 = sshll.u32 (%p33_p3), %s3634_s26, 5  ;;  %s3581_s11 = smul.u32 (%p33_p3), 160, %s232_s9 }
  0x10   : > { %s3714_s14 = scalar_lea.vmem (%p33_p3), %s5171_s0, %s2448_s10 }
  0x11   : > { %v250_v0 = vld [vmem:[%s3714_s14] sm:$0xff] (%p33_p3)  ;;  %v252_v1 = vld [vmem:[%s3714_s14 + $0x8] sm:$0xff] (%p33_p3)  ;;  %v254_v2 = vld [vmem:[%s3714_s14 + $0x10] sm:$0xff] (%p33_p3)  ;;  %s3722_s15 = scalar_lea.vmem (%p33_p3), [#allocation2], %s3581_s11 }
  0x12   : > { %v256_v3 = vld [vmem:[%s3714_s14 + $0x18] sm:$0xff] (%p33_p3)  ;;  %v258_v4 = vld [vmem:[%s3714_s14 + $0x40] sm:$0xff] (%p33_p3)  ;;  %v260_v5 = vld [vmem:[%s3714_s14 + $0x48] sm:$0xff] (%p33_p3)  ;;  %251 = vst [vmem:[%s3722_s15] sm:$0xff] (%p33_p3), %v250_v0 }
  0x13   : > { %253 = vst [vmem:[%s3722_s15 + $0x8] sm:$0xff] (%p33_p3), %v252_v1  ;;  %255 = vst [vmem:[%s3722_s15 + $0x10] sm:$0xff] (%p33_p3), %v254_v2  ;;  %v262_v6 = vld [vmem:[%s3714_s14 + $0x50] sm:$0xff] (%p33_p3)  ;;  %v264_v7 = vld [vmem:[%s3714_s14 + $0x58] sm:$0xff] (%p33_p3) }
  0x14   : > { %257 = vst [vmem:[%s3722_s15 + $0x18] sm:$0xff] (%p33_p3), %v256_v3  ;;  %259 = vst [vmem:[%s3722_s15 + $0x20] sm:$0xff] (%p33_p3), %v258_v4  ;;  %v266_v8 = vld [vmem:[%s3714_s14 + $0x80] sm:$0xff] (%p33_p3)  ;;  %v268_v9 = vld [vmem:[%s3714_s14 + $0x88] sm:$0xff] (%p33_p3) }
  0x15   : > { %261 = vst [vmem:[%s3722_s15 + $0x28] sm:$0xff] %v260_v5  ;;  %263 = vst [vmem:[%s3722_s15 + $0x30] sm:$0xff] %v262_v6  ;;  %v270_v10 = vld [vmem:[%s3714_s14 + $0x90] sm:$0xff]  ;;  %v272_v11 = vld [vmem:[%s3714_s14 + $0x98] sm:$0xff] }
  0x16   : > { %265 = vst [vmem:[%s3722_s15 + $0x38] sm:$0xff] %v264_v7  ;;  %267 = vst [vmem:[%s3722_s15 + $0x40] sm:$0xff] %v266_v8  ;;  %v274_v12 = vld [vmem:[%s3714_s14 + $0xc0] sm:$0xff]  ;;  %v276_v13 = vld [vmem:[%s3714_s14 + $0xc8] sm:$0xff] }
  0x17   : > { %269 = vst [vmem:[%s3722_s15 + $0x48] sm:$0xff] %v268_v9  ;;  %271 = vst [vmem:[%s3722_s15 + $0x50] sm:$0xff] %v270_v10  ;;  %v278_v14 = vld [vmem:[%s3714_s14 + $0xd0] sm:$0xff]  ;;  %v280_v15 = vld [vmem:[%s3714_s14 + $0xd8] sm:$0xff] }
  0x18   : > { %273 = vst [vmem:[%s3722_s15 + $0x58] sm:$0xff] %v272_v11  ;;  %275 = vst [vmem:[%s3722_s15 + $0x60] sm:$0xff] %v274_v12  ;;  %v282_v16 = vld [vmem:[%s3714_s14 + $0x100] sm:$0xff]  ;;  %v284_v17 = vld [vmem:[%s3714_s14 + $0x108] sm:$0xff] }
  0x19   : > { %277 = vst [vmem:[%s3722_s15 + $0x68] sm:$0xff] %v276_v13  ;;  %279 = vst [vmem:[%s3722_s15 + $0x70] sm:$0xff] %v278_v14  ;;  %v286_v18 = vld [vmem:[%s3714_s14 + $0x110] sm:$0xff]  ;;  %v288_v19 = vld [vmem:[%s3714_s14 + $0x118] sm:$0xff] }
  0x1a   : > { %281 = vst [vmem:[%s3722_s15 + $0x78] sm:$0xff] %v280_v15  ;;  %283 = vst [vmem:[%s3722_s15 + $0x80] sm:$0xff] %v282_v16 }
  0x1b   : > { %285 = vst [vmem:[%s3722_s15 + $0x88] sm:$0xff] %v284_v17  ;;  %287 = vst [vmem:[%s3722_s15 + $0x90] sm:$0xff] %v286_v18 }
  0x1c   : > { %289 = vst [vmem:[%s3722_s15 + $0x98] sm:$0xff] %v288_v19 }
  0x1d PF: > { %p2212_p5 = scmp.ge.s32.totalorder %s3634_s26, 1  ;;  %p294_p6 = scmp.lt.s32.totalorder %s3634_s26, 3 }
  0x1f   : > { %p295_p7 = pnand %p2212_p5, %p294_p6 }
  0x21   : > { %298 = sbr.rel (%p295_p7) target bundleno = 1158 (0x486), region = 67 }
  0x28   : > { %s301_s16 = sand.u32 1, %s3626_s24   ;;  %v5179_v20 = vmov 0.0   ;;  %v357_v21 = vld [vmem:[%s5173_s2] sm:$0xff]  ;;  %v3637_v22 = vmov 0   ;;  %vm367_vm0 = vcmask 1043456   ;;  %v544_v49 = vld [vmem:[%s5174_s3 + $0x88] sm:$0xff] }
  0x29   : > { %s3582_s17 = smul.u32 160, %s301_s16  ;;  %444 = vmatprep.mubr.f32.mxu0 %v5179_v20  ;;  %515 = vmatprep.mubr.f32.mxu1 %v5179_v20  ;;  %v543_v46 = vld [vmem:[%s5174_s3 + $0x80] sm:$0xff]  ;;  %v528_v52 = vld [vmem:[%s5174_s3 + $0x8] sm:$0xff]  ;;  %v545_v59 = vld [vmem:[%s5174_s3 + $0x90] sm:$0xff]  ;;  %vm363_vm1 = vcmask 293888   ;;  %vm3639_vm2 = vmmov 0  }
  0x2a   : > { %3611 = vset.pattern.permute.xlu0 %v3637_v22  ;;  %v527_v50 = vld [vmem:[%s5174_s3] sm:$0xff]  ;;  %v2237_v55 = vld [vmem:[%s5174_s3 + $0x188] sm:$0xff]  ;;  %v546_v60 = vld [vmem:[%s5174_s3 + $0x98] sm:$0xff]  ;;  %v3823_v62 = vpack.c.bf16 %v544_v49, %v543_v46  ;;  %vm1394_vm3 = vcmask 261120   ;;  %p332_p8 = scmp.lt.s32.totalorder %s2206_s27, 1  ;;  %vm2143_vm4 = vcmask 1040384  }
  0x2b   : > { %360 = vperm.xlu0 %3611, %v357_v21   ;;  %s3766_s20 = scalar_lea.vmem [#allocation2], %s3582_s17  ;;  %v2236_v53 = vld [vmem:[%s5174_s3 + $0x180] sm:$0xff]  ;;  %v2221_v57 = vld [vmem:[%s5174_s3 + $0x108] sm:$0xff]  ;;  %v2238_v63 = vld [vmem:[%s5174_s3 + $0x190] sm:$0xff]  ;;  %v3831_v1 = vpack.c.bf16 %v528_v52, %v527_v50  ;;  %v3838_v4 = vpack.c.bf16 %v546_v60, %v545_v59  ;;  %vm2145_vm5 = vcmask 123904  }
  0x2c   : > { %v338_v23 = vld [vmem:[%s3766_s20 + $0x8] sm:$0xff]  ;;  %v340_v25 = vld [vmem:[%s3766_s20 + $0x18] sm:$0xff]  ;;  %v337_v28 = vld [vmem:[%s3766_s20] sm:$0xff]  ;;  %v3833_v2 = vpack.c.bf16 %v2237_v55, %v2236_v53  ;;  %s5408_s27 = smov (!%p332_p8, %s2206_s27), 1 }
  0x2d   : > { %v342_v24 = vld [vmem:[%s3766_s20 + $0x28] sm:$0xff]  ;;  %v344_v27 = vld [vmem:[%s3766_s20 + $0x38] sm:$0xff]  ;;  %v341_v29 = vld [vmem:[%s3766_s20 + $0x20] sm:$0xff]  ;;  %s2213_s30 = sshll.u32 %s5408_s27, 1 }
  0x2e   : > { %v3041_v26 = vpack.c.bf16 %v342_v24, %v338_v23  ;;  %v3049_v30 = vpack.c.bf16 %v344_v27, %v340_v25  ;;  %v3043_v31 = vpack.c.bf16 %v341_v29, %v337_v28  ;;  %v339_v32 = vld [vmem:[%s3766_s20 + $0x10] sm:$0xff]  ;;  %v346_v34 = vld [vmem:[%s3766_s20 + $0x48] sm:$0xff]  ;;  %v348_v37 = vld [vmem:[%s3766_s20 + $0x58] sm:$0xff]  ;;  %5255 = vst [vmem:[#allocation3_spill] sm:$0xff] %v3833_v2  ;;  %s335_s11 = scalar_lea.vmem %s5178_s7, %s2213_s30 }
  0x2f   : > { %v343_v33 = vld [vmem:[%s3766_s20 + $0x30] sm:$0xff]  ;;  %v350_v36 = vld [vmem:[%s3766_s20 + $0x68] sm:$0xff]  ;;  %v352_v38 = vld [vmem:[%s3766_s20 + $0x78] sm:$0xff] }
  0x30   : > { %3042 = vmatprep.subr.bf16.mxu0 %v3041_v26  ;;  %v3051_v35 = vpack.c.bf16 %v343_v33, %v339_v32  ;;  %3050 = vmatprep.subr.bf16.mxu1 %v3049_v30  ;;  %v3045_v39 = vpack.c.bf16 %v350_v36, %v346_v34  ;;  %v3053_v40 = vpack.c.bf16 %v352_v38, %v348_v37  ;;  %v345_v41 = vld [vmem:[%s3766_s20 + $0x40] sm:$0xff]  ;;  %v347_v43 = vld [vmem:[%s3766_s20 + $0x50] sm:$0xff]  ;;  %v354_v48 = vld [vmem:[%s3766_s20 + $0x88] sm:$0xf] }
  0x31   : > { %3044 = vmatpush1.bf16.msra.mxu0 %v3043_v31  ;;  %v349_v42 = vld [vmem:[%s3766_s20 + $0x60] sm:$0xff]  ;;  %v351_v45 = vld [vmem:[%s3766_s20 + $0x70] sm:$0xff]  ;;  %v356_v51 = vld [vmem:[%s3766_s20 + $0x98] sm:$0xf] }
  0x32   : > { %3052 = vmatpush1.bf16.msra.mxu1 %v3051_v35  ;;  %v3047_v44 = vpack.c.bf16 %v349_v42, %v345_v41  ;;  %3046 = vmatprep.subr.bf16.mxu0 %v3045_v39  ;;  %v3055_v47 = vpack.c.bf16 %v351_v45, %v347_v43  ;;  %v336_v54 = vld [vmem:[%s5172_s1] sm:$0xff]  ;;  %v355_v61 = vld [vmem:[%s3766_s20 + $0x90] sm:$0xf]  ;;  %v2239_v0 = vld [vmem:[%s5174_s3 + $0x198] sm:$0xff] }
  0x33   : > { %3054 = vmatprep.subr.bf16.mxu1 %v3053_v40  ;;  %v2220_v56 = vld [vmem:[%s5174_s3 + $0x100] sm:$0xff]  ;;  %v529_v5 = vld [vmem:[%s5174_s3 + $0x10] sm:$0xff]  ;;  %v530_v6 = vld [vmem:[%s5174_s3 + $0x18] sm:$0xff]  ;;  %v3851_v8 = vpack.c.bf16 %v2239_v0, %v2238_v63 }
  0x34   : > { %v353_v58 = vld [vmem:[%s3766_s20 + $0x80] sm:$0xf]  ;;  %v3836_v3 = vpack.c.bf16 %v2221_v57, %v2220_v56  ;;  %v2222_v7 = vld [vmem:[%s5174_s3 + $0x110] sm:$0xff]  ;;  %v2223_v9 = vld [vmem:[%s5174_s3 + $0x118] sm:$0xff]  ;;  %v3872_v14 = vpack.c.bf16 %v530_v6, %v529_v5 }
  0x35   : > { %3048 = vmatpush1.bf16.msra.mxu0 %v3047_v44  ;;  %5257 = vst [vmem:[#allocation5_spill] sm:$0xff] %v3851_v8  ;;  %v547_v10 = vld [vmem:[%s5174_s3 + $0xa0] sm:$0xff]  ;;  %v548_v11 = vld [vmem:[%s5174_s3 + $0xa8] sm:$0xff]  ;;  %v3876_v15 = vpack.c.bf16 %v2223_v9, %v2222_v7  ;;  %v549_v23 = vld [vmem:[%s5174_s3 + $0xb0] sm:$0xff] }
  0x36   : > { %3056 = vmatpush1.bf16.msra.mxu1 %v3055_v47  ;;  %2214 = vmatprep.subr.msk.mxu0 %vm367_vm0, %v354_v48  ;;  %5256 = vst [vmem:[#allocation4_spill] sm:$0xff] %v3836_v3  ;;  %v2240_v12 = vld [vmem:[%s5174_s3 + $0x1a0] sm:$0xff]  ;;  %v2241_v13 = vld [vmem:[%s5174_s3 + $0x1a8] sm:$0xff]  ;;  %v3878_v16 = vpack.c.bf16 %v548_v11, %v547_v10  ;;  %v550_v24 = vld [vmem:[%s5174_s3 + $0xb8] sm:$0xff] }
  0x37   : > { %2217 = vmatprep.subr.msk.mxu1 %vm367_vm0, %v356_v51  ;;  %5258 = vst [vmem:[#allocation6_spill] sm:$0xff] %v3876_v15  ;;  %v531_v17 = vld [vmem:[%s5174_s3 + $0x20] sm:$0xff]  ;;  %v532_v18 = vld [vmem:[%s5174_s3 + $0x28] sm:$0xff]  ;;  %v3890_v21 = vpack.c.bf16 %v2241_v13, %v2240_v12  ;;  %v2242_v25 = vld [vmem:[%s5174_s3 + $0x1b0] sm:$0xff]  ;;  %v3914_v29 = vpack.c.bf16 %v550_v24, %v549_v23 }
  0x38   : > { %v2224_v19 = vld [vmem:[%s5174_s3 + $0x120] sm:$0xff]  ;;  %v2225_v22 = vld [vmem:[%s5174_s3 + $0x128] sm:$0xff]  ;;  %v2243_v26 = vld [vmem:[%s5174_s3 + $0x1b8] sm:$0xff]  ;;  %v3908_v27 = vpack.c.bf16 %v532_v18, %v531_v17 }
  0x39   : > { %2215 = vmatpush1.msk.msra.mxu0 %vm367_vm0, %v353_v58  ;;  %5259 = vst [vmem:[#allocation7_spill] sm:$0xff] %v3890_v21  ;;  %v3912_v28 = vpack.c.bf16 %v2225_v22, %v2224_v19  ;;  %v533_v30 = vld [vmem:[%s5174_s3 + $0x30] sm:$0xff]  ;;  %v534_v31 = vld [vmem:[%s5174_s3 + $0x38] sm:$0xff]  ;;  %v3926_v33 = vpack.c.bf16 %v2243_v26, %v2242_v25  ;;  %v551_v35 = vld [vmem:[%s5174_s3 + $0xc0] sm:$0xff] }
  0x3a   : > { %2218 = vmatpush1.msk.msra.mxu1 %vm367_vm0, %v355_v61  ;;  %2216 = vmatmul.mubr.msk.f32.vlgmr.msra.gmra.mrb[0].mxu0 %vm363_vm1, %v336_v54  ;;  %v2226_v32 = vld [vmem:[%s5174_s3 + $0x130] sm:$0xff]  ;;  %v2227_v34 = vld [vmem:[%s5174_s3 + $0x138] sm:$0xff]  ;;  %v552_v36 = vld [vmem:[%s5174_s3 + $0xc8] sm:$0xff]  ;;  %v3944_v39 = vpack.c.bf16 %v534_v31, %v533_v30 }
  0x3b   : > { %2219 = vmatmul.mubr.msk.f32.vlgmr.msra.gmra.mrb[0].mxu1 %vm363_vm1, %v336_v54  ;;  %3058 = vmatprep.subr.bf16.mxu0 %v3823_v62  ;;  %5260 = vst [vmem:[#allocation8_spill] sm:$0xff] %v3912_v28  ;;  %5261 = vst [vmem:[#allocation9_spill] sm:$0xff] %v3926_v33  ;;  %v2244_v37 = vld [vmem:[%s5174_s3 + $0x1c0] sm:$0xff]  ;;  %v2245_v38 = vld [vmem:[%s5174_s3 + $0x1c8] sm:$0xff]  ;;  %v3948_v40 = vpack.c.bf16 %v2227_v34, %v2226_v32  ;;  %v3950_v41 = vpack.c.bf16 %v552_v36, %v551_v35 }
  0x3c   : > { %3060 = vmatpush3.bf16.msra.mxu0 %v3831_v1  ;;  %3090 = vmatprep.subr.bf16.mxu1 %v3833_v2  ;;  %v535_v42 = vld [vmem:[%s5174_s3 + $0x40] sm:$0xff]  ;;  %v536_v43 = vld [vmem:[%s5174_s3 + $0x48] sm:$0xff]  ;;  %v3962_v45 = vpack.c.bf16 %v2245_v38, %v2244_v37  ;;  %v553_v47 = vld [vmem:[%s5174_s3 + $0xd0] sm:$0xff] }
  0x3d   : > { %3092 = vmatpush3.bf16.msra.mxu1 %v3836_v3  ;;  %3062 = vmatprep.subr.bf16.mxu0 %v3838_v4  ;;  %5262 = vst [vmem:[#allocation10_spill] sm:$0xff] %v3948_v40  ;;  %v2228_v44 = vld [vmem:[%s5174_s3 + $0x140] sm:$0xff]  ;;  %v2229_v46 = vld [vmem:[%s5174_s3 + $0x148] sm:$0xff]  ;;  %v554_v48 = vld [vmem:[%s5174_s3 + $0xd8] sm:$0xff]  ;;  %v3980_v51 = vpack.c.bf16 %v536_v43, %v535_v42 }
  0x3e   : > { %3094 = vmatprep.subr.bf16.mxu1 %v3851_v8  ;;  %5263 = vst [vmem:[#allocation11_spill] sm:$0xff] %v3962_v45  ;;  %v2246_v49 = vld [vmem:[%s5174_s3 + $0x1d0] sm:$0xff]  ;;  %v2247_v50 = vld [vmem:[%s5174_s3 + $0x1d8] sm:$0xff]  ;;  %v3984_v52 = vpack.c.bf16 %v2229_v46, %v2228_v44  ;;  %v3986_v53 = vpack.c.bf16 %v554_v48, %v553_v47  ;;  %v555_v59 = vld [vmem:[%s5174_s3 + $0xe0] sm:$0xff] }
  0x3f   : > { %v537_v54 = vld [vmem:[%s5174_s3 + $0x50] sm:$0xff]  ;;  %v538_v55 = vld [vmem:[%s5174_s3 + $0x58] sm:$0xff]  ;;  %v3998_v57 = vpack.c.bf16 %v2247_v50, %v2246_v49  ;;  %v556_v60 = vld [vmem:[%s5174_s3 + $0xe8] sm:$0xff] }
  0x40   : > { %3064 = vmatpush3.bf16.msra.mxu0 %v3872_v14  ;;  %5264 = vst [vmem:[#allocation12_spill] sm:$0xff] %v3984_v52  ;;  %v2230_v56 = vld [vmem:[%s5174_s3 + $0x150] sm:$0xff]  ;;  %v2231_v58 = vld [vmem:[%s5174_s3 + $0x158] sm:$0xff]  ;;  %v4010_v61 = vpack.c.bf16 %v538_v55, %v537_v54  ;;  %v4016_v0 = vpack.c.bf16 %v556_v60, %v555_v59  ;;  %v539_v5 = vld [vmem:[%s5174_s3 + $0x60] sm:$0xff] }
  0x41   : > { %3096 = vmatpush3.bf16.msra.mxu1 %v3876_v15  ;;  %3066 = vmatprep.subr.bf16.mxu0 %v3878_v16  ;;  %5265 = vst [vmem:[#allocation13_spill] sm:$0xff] %v3998_v57  ;;  %v4014_v63 = vpack.c.bf16 %v2231_v58, %v2230_v56  ;;  %v540_v6 = vld [vmem:[%s5174_s3 + $0x68] sm:$0xff]  ;;  %v2248_v9 = vld [vmem:[%s5174_s3 + $0x1e0] sm:$0xff]  ;;  %v557_v18 = vld [vmem:[%s5174_s3 + $0xf0] sm:$0xff] }
  0x42   : > { %3098 = vmatprep.subr.bf16.mxu1 %v3890_v21  ;;  %v4026_v7 = vpack.c.bf16 %v540_v6, %v539_v5  ;;  %v2249_v10 = vld [vmem:[%s5174_s3 + $0x1e8] sm:$0xff]  ;;  %v2232_v12 = vld [vmem:[%s5174_s3 + $0x160] sm:$0xff]  ;;  %v558_v19 = vld [vmem:[%s5174_s3 + $0xf8] sm:$0xff] }
  0x43   : > { %5266 = vst [vmem:[#allocation14_spill] sm:$0xff] %v4014_v63  ;;  %v4037_v11 = vpack.c.bf16 %v2249_v10, %v2248_v9  ;;  %v2233_v13 = vld [vmem:[%s5174_s3 + $0x168] sm:$0xff]  ;;  %v4054_v22 = vpack.c.bf16 %v558_v19, %v557_v18  ;;  %v541_v23 = vld [vmem:[%s5174_s3 + $0x70] sm:$0xff]  ;;  %v542_v24 = vld [vmem:[%s5174_s3 + $0x78] sm:$0xff] }
  0x44   : > { %3068 = vmatpush3.bf16.msra.mxu0 %v3908_v27  ;;  %v4045_v17 = vpack.c.bf16 %v2233_v13, %v2232_v12  ;;  %v4063_v25 = vpack.c.bf16 %v542_v24, %v541_v23  ;;  %v2250_v26 = vld [vmem:[%s5174_s3 + $0x1f0] sm:$0xff]  ;;  %v2251_v30 = vld [vmem:[%s5174_s3 + $0x1f8] sm:$0xff]  ;;  %v2268_v36 = vld [vmem:[%s5174_s3 + $0x280] sm:$0xff] }
  0x45   : > { %3100 = vmatpush3.bf16.msra.mxu1 %v3912_v28  ;;  %3070 = vmatprep.subr.bf16.mxu0 %v3914_v29  ;;  %5267 = vst [vmem:[#allocation15_spill] sm:$0xff] %v4037_v11  ;;  %v4072_v31 = vpack.c.bf16 %v2251_v30, %v2250_v26  ;;  %v2234_v32 = vld [vmem:[%s5174_s3 + $0x170] sm:$0xff]  ;;  %v2235_v34 = vld [vmem:[%s5174_s3 + $0x178] sm:$0xff]  ;;  %v2269_v37 = vld [vmem:[%s5174_s3 + $0x288] sm:$0xff] }
  0x46   : > { %3102 = vmatprep.subr.bf16.mxu1 %v3926_v33  ;;  %5268 = vst [vmem:[#allocation16_spill] sm:$0xff] %v4045_v17  ;;  %v4081_v35 = vpack.c.bf16 %v2235_v34, %v2234_v32  ;;  %v4090_v38 = vpack.c.bf16 %v2269_v37, %v2268_v36  ;;  %v2300_v42 = vld [vmem:[%s5174_s3 + $0x380] sm:$0xff]  ;;  %v2301_v43 = vld [vmem:[%s5174_s3 + $0x388] sm:$0xff]  ;;  %v2270_v10 = vld [vmem:[%s5174_s3 + $0x290] sm:$0xff] }
  0x47   : > { %5269 = vst [vmem:[#allocation17_spill] sm:$0xff] %v4072_v31  ;;  %v4100_v44 = vpack.c.bf16 %v2301_v43, %v2300_v42  ;;  %v2252_v54 = vld [vmem:[%s5174_s3 + $0x200] sm:$0xff]  ;;  %v2253_v55 = vld [vmem:[%s5174_s3 + $0x208] sm:$0xff]  ;;  %v2271_v12 = vld [vmem:[%s5174_s3 + $0x298] sm:$0xff] }
  0x48   : > { %3072 = vmatpush3.bf16.msra.mxu0 %v3944_v39  ;;  %5270 = vst [vmem:[#allocation18_spill] sm:$0xff] %v4081_v35  ;;  %v2284_v60 = vld [vmem:[%s5174_s3 + $0x300] sm:$0xff]  ;;  %v2285_v9 = vld [vmem:[%s5174_s3 + $0x308] sm:$0xff]  ;;  %v4129_v18 = vpack.c.bf16 %v2253_v55, %v2252_v54  ;;  %v2302_v19 = vld [vmem:[%s5174_s3 + $0x390] sm:$0xff]  ;;  %v4148_v36 = vpack.c.bf16 %v2271_v12, %v2270_v10 }
  0x49   : > { %3104 = vmatpush3.bf16.msra.mxu1 %v3948_v40  ;;  %3074 = vmatprep.subr.bf16.mxu0 %v3950_v41  ;;  %5271 = vst [vmem:[#allocation19_spill] sm:$0xff] %v4100_v44  ;;  %v2303_v23 = vld [vmem:[%s5174_s3 + $0x398] sm:$0xff]  ;;  %v2254_v24 = vld [vmem:[%s5174_s3 + $0x210] sm:$0xff]  ;;  %v4146_v34 = vpack.c.bf16 %v2285_v9, %v2284_v60  ;;  %v2272_v37 = vld [vmem:[%s5174_s3 + $0x2a0] sm:$0xff] }
  0x4a   : > { %3106 = vmatprep.subr.bf16.mxu1 %v3962_v45  ;;  %v2255_v26 = vld [vmem:[%s5174_s3 + $0x218] sm:$0xff]  ;;  %v2273_v42 = vld [vmem:[%s5174_s3 + $0x2a8] sm:$0xff]  ;;  %v2274_v10 = vld [vmem:[%s5174_s3 + $0x2b0] sm:$0xff] }
  0x4b   : > { %5272 = vst [vmem:[#allocation20_spill] sm:$0xff] %v4146_v34  ;;  %v2305_v54 = vld [vmem:[%s5174_s3 + $0x3a8] sm:$0xff]  ;;  %v2275_v12 = vld [vmem:[%s5174_s3 + $0x2b8] sm:$0xff]  ;;  %v2310_v20 = vld [vmem:[%s5174_s3 + $0x3d0] sm:$0xff] }
  0x4c   : > { %3076 = vmatpush3.bf16.msra.mxu0 %v3980_v51  ;;  %v2257_v60 = vld [vmem:[%s5174_s3 + $0x228] sm:$0xff]  ;;  %v2354_v45 = vld [vmem:[%s5174_s3 + $0x530] sm:$0xff]  ;;  %v2356_v33 = vld [vmem:[%s5174_s3 + $0x540] sm:$0xff] }
  0x4d   : > { %3108 = vmatpush3.bf16.msra.mxu1 %v3984_v52  ;;  %3078 = vmatprep.subr.bf16.mxu0 %v3986_v53  ;;  %v2352_v52 = vld [vmem:[%s5174_s3 + $0x520] sm:$0xff]  ;;  %v2342_v40 = vld [vmem:[%s5174_s3 + $0x4d0] sm:$0xff] }
  0x4e   : > { %3110 = vmatprep.subr.bf16.mxu1 %v3998_v57  ;;  %v2344_v28 = vld [vmem:[%s5174_s3 + $0x4e0] sm:$0xff]  ;;  %v2358_v21 = vld [vmem:[%s5174_s3 + $0x550] sm:$0xff] }
  0x4f   : > { %v2346_v15 = vld [vmem:[%s5174_s3 + $0x4f0] sm:$0xff]  ;;  %v2360_v8 = vld [vmem:[%s5174_s3 + $0x560] sm:$0xff] }
  0x50   : > { %3080 = vmatpush3.bf16.msra.mxu0 %v4010_v61  ;;  %v2396_v3 = vld [vmem:[%s5174_s3 + $0x680] sm:$0xff]  ;;  %v2362_v2 = vld [vmem:[%s5174_s3 + $0x570] sm:$0xff] }
  0x51   : > { %3112 = vmatpush3.bf16.msra.mxu1 %v4014_v63  ;;  %3082 = vmatprep.subr.bf16.mxu0 %v4016_v0  ;;  %v2336_v63 = vld [vmem:[%s5174_s3 + $0x4a0] sm:$0xff] }
  0x52   : > { %3114 = vmatprep.subr.bf16.mxu1 %v4037_v11 }
  0x54   : > { %3084 = vmatpush3.bf16.msra.mxu0 %v4026_v7 }
  0x55   : > { %3116 = vmatpush3.bf16.msra.mxu1 %v4045_v17  ;;  %3086 = vmatprep.subr.bf16.mxu0 %v4054_v22  ;;  %v2318_v17 = vld [vmem:[%s5174_s3 + $0x410] sm:$0xff] }
  0x56   : > { %3118 = vmatprep.subr.bf16.mxu1 %v4072_v31  ;;  %v2348_v31 = vld [vmem:[%s5174_s3 + $0x500] sm:$0xff] }
  0x58   : > { %3088 = vmatpush3.bf16.msra.mxu0 %v4063_v25 }
  0x59   : > { %3120 = vmatpush3.bf16.msra.mxu1 %v4081_v35  ;;  %3122 = vmatprep.subr.bf16.mxu0 %v4090_v38  ;;  %v2334_v35 = vld [vmem:[%s5174_s3 + $0x490] sm:$0xff] }
  0x5a   : > { %3154 = vmatprep.subr.bf16.mxu1 %v4100_v44  ;;  %v2298_v44 = vld [vmem:[%s5174_s3 + $0x370] sm:$0xff] }
  0xaa   : > { %v361_v46 = vpop.permute.xlu0 %360 }
 0x10d   : > { %v446_v47 = vpop.f32.mrb[0].mxu0 }
 0x10e   : > { %v447_v48 = vadd.f32 %v446_v47, %v361_v46  ;;  %v517_v49 = vpop.f32.mrb[0].mxu1  ;;  %v448_v50 = vpop.f32.mrb[1].mxu0  ;;  %v2286_v47 = vld [vmem:[%s5174_s3 + $0x310] sm:$0xff] }
 0x10f   : > { %v4109_v56 = vadd.f32 %v517_v49, %v361_v46  ;;  %v449_v58 = vadd.f32 %v448_v50, %v361_v46  ;;  %v519_v59 = vpop.f32.mrb[1].mxu1  ;;  %v4167_v49 = vpack.c.bf16 %v2255_v26, %v2254_v24  ;;  %v2304_v50 = vld [vmem:[%s5174_s3 + $0x3a0] sm:$0xff]  ;;  %v2289_v24 = vld [vmem:[%s5174_s3 + $0x328] sm:$0xff] }
 0x110   : > { %v4114_v5 = vmax.f32 %v447_v48, 0.0  ;;  %v4116_v6 = vadd.f32 %v519_v59, %v361_v46  ;;  %v4158_v46 = vpack.c.bf16 %v2303_v23, %v2302_v19  ;;  %v2287_v48 = vld [vmem:[%s5174_s3 + $0x318] sm:$0xff]  ;;  %v2256_v59 = vld [vmem:[%s5174_s3 + $0x220] sm:$0xff]  ;;  %v4195_v19 = vpack.c.bf16 %v2305_v54, %v2304_v50  ;;  %v2277_v50 = vld [vmem:[%s5174_s3 + $0x2c8] sm:$0xff] }
 0x111   : > { %v4127_v13 = vmax.f32 %v449_v58, 0.0  ;;  %v4176_v58 = vpack.c.bf16 %v2273_v42, %v2272_v37  ;;  %v4186_v9 = vpack.c.bf16 %v2287_v48, %v2286_v47  ;;  %v2288_v23 = vld [vmem:[%s5174_s3 + $0x320] sm:$0xff]  ;;  %v4204_v26 = vpack.c.bf16 %v2257_v60, %v2256_v59  ;;  %v2258_v42 = vld [vmem:[%s5174_s3 + $0x230] sm:$0xff]  ;;  %v2291_v59 = vld [vmem:[%s5174_s3 + $0x338] sm:$0xff] }
 0x112   : > { %v665_v43 = vrot.slane %v4114_v5, 1  ;;  %5273 = vst [vmem:[#allocation21_spill] sm:$0xff] %v4158_v46  ;;  %5275 = vst [vmem:[#allocation23_spill] sm:$0xff] %v4195_v19  ;;  %v4213_v37 = vpack.c.bf16 %v2275_v12, %v2274_v10  ;;  %v4222_v47 = vpack.c.bf16 %v2289_v24, %v2288_v23  ;;  %v2276_v48 = vld [vmem:[%s5174_s3 + $0x2c0] sm:$0xff]  ;;  %v2309_v12 = vld [vmem:[%s5174_s3 + $0x3c8] sm:$0xff] }
 0x113   : > { %623 = vmatprep.mubr.f32.mxu0 %v4127_v13  ;;  %v666_v30 = vrot.slane %v4127_v13, 1  ;;  %v774_v32 = vrot.slane %v4127_v13, 2  ;;  %v882_v55 = vrot.slane %v4127_v13, 3  ;;  %5274 = vst [vmem:[#allocation22_spill] sm:$0xff] %v4186_v9  ;;  %v2308_v10 = vld [vmem:[%s5174_s3 + $0x3c0] sm:$0xff]  ;;  %v4249_v23 = vpack.c.bf16 %v2277_v50, %v2276_v48 }
 0x114   : > { %624 = vmatmul.mubr.f32.vlgmr.msra.gmra.mrb[2].mxu0 %v4114_v5  ;;  %5276 = vst [vmem:[#allocation24_spill] sm:$0xff] %v4222_v47  ;;  %v2260_v24 = vld [vmem:[%s5174_s3 + $0x240] sm:$0xff]  ;;  %v4267_v48 = vpack.c.bf16 %v2309_v12, %v2308_v10  ;;  %v2311_v10 = vld [vmem:[%s5174_s3 + $0x3d8] sm:$0xff] }
 0x115   : > { %3124 = vmatpush3.bf16.msra.mxu0 %v4129_v18  ;;  %733 = vmatprep.mubr.f32.mxu1 %v666_v30  ;;  %v2306_v30 = vld [vmem:[%s5174_s3 + $0x3b0] sm:$0xff]  ;;  %v2292_v50 = vld [vmem:[%s5174_s3 + $0x340] sm:$0xff] }
 0x116   : > { %841 = vmatprep.mubr.f32.mxu0 %v774_v32  ;;  %734 = vmatmul.mubr.f32.vlgmr.msra.gmra.mrb[2].mxu1 %v665_v43  ;;  %v2307_v32 = vld [vmem:[%s5174_s3 + $0x3b8] sm:$0xff]  ;;  %5279 = vst [vmem:[#allocation27_spill] sm:$0xff] %v4267_v48 }
 0x117   : > { %3156 = vmatpush3.bf16.msra.mxu1 %v4146_v34  ;;  %3126 = vmatprep.subr.bf16.mxu0 %v4148_v36  ;;  %v2259_v43 = vld [vmem:[%s5174_s3 + $0x238] sm:$0xff]  ;;  %v4231_v54 = vpack.c.bf16 %v2307_v32, %v2306_v30  ;;  %v2261_v30 = vld [vmem:[%s5174_s3 + $0x248] sm:$0xff]  ;;  %v2332_v34 = vld [vmem:[%s5174_s3 + $0x480] sm:$0xff] }
 0x118   : > { %949 = vmatprep.mubr.f32.mxu1 %v882_v55  ;;  %3158 = vmatprep.subr.bf16.mxu1 %v4158_v46  ;;  %v2290_v55 = vld [vmem:[%s5174_s3 + $0x330] sm:$0xff]  ;;  %v4240_v60 = vpack.c.bf16 %v2259_v43, %v2258_v42  ;;  %v2279_v43 = vld [vmem:[%s5174_s3 + $0x2d8] sm:$0xff]  ;;  %v2296_v46 = vld [vmem:[%s5174_s3 + $0x360] sm:$0xff] }
 0x119   : > { %3128 = vmatpush3.bf16.msra.mxu0 %v4167_v49  ;;  %5277 = vst [vmem:[#allocation25_spill] sm:$0xff] %v4231_v54  ;;  %v4258_v32 = vpack.c.bf16 %v2291_v59, %v2290_v55  ;;  %v2278_v42 = vld [vmem:[%s5174_s3 + $0x2d0] sm:$0xff]  ;;  %v2293_v55 = vld [vmem:[%s5174_s3 + $0x348] sm:$0xff]  ;;  %v4276_v59 = vpack.c.bf16 %v2261_v30, %v2260_v24  ;;  %v2263_v24 = vld [vmem:[%s5174_s3 + $0x258] sm:$0xff] }
 0x11a   : > { %3130 = vmatprep.subr.bf16.mxu0 %v4176_v58  ;;  %v4285_v12 = vpack.c.bf16 %v2279_v43, %v2278_v42  ;;  %v4294_v30 = vpack.c.bf16 %v2293_v55, %v2292_v50  ;;  %v2281_v42 = vld [vmem:[%s5174_s3 + $0x2e8] sm:$0xff]  ;;  %v4303_v43 = vpack.c.bf16 %v2311_v10, %v2310_v20  ;;  %v2295_v50 = vld [vmem:[%s5174_s3 + $0x358] sm:$0xff] }
 0x11b   : > { %3160 = vmatpush3.bf16.msra.mxu1 %v4186_v9  ;;  %5278 = vst [vmem:[#allocation26_spill] sm:$0xff] %v4258_v32  ;;  %v2313_v20 = vld [vmem:[%s5174_s3 + $0x3e8] sm:$0xff]  ;;  %v2282_v9 = vld [vmem:[%s5174_s3 + $0x2f0] sm:$0xff] }
 0x11c   : > { %3162 = vmatprep.subr.bf16.mxu1 %v4195_v19  ;;  %5280 = vst [vmem:[#allocation28_spill] sm:$0xff] %v4294_v30  ;;  %5281 = vst [vmem:[#allocation29_spill] sm:$0xff] %v4303_v43  ;;  %v2294_v19 = vld [vmem:[%s5174_s3 + $0x350] sm:$0xff] }
 0x11d   : > { %3132 = vmatpush3.bf16.msra.mxu0 %v4204_v26 }
 0x11e   : > { %3134 = vmatprep.subr.bf16.mxu0 %v4213_v37 }
 0x11f   : > { %3164 = vmatpush3.bf16.msra.mxu1 %v4222_v47  ;;  %v2280_v47 = vld [vmem:[%s5174_s3 + $0x2e0] sm:$0xff] }
 0x120   : > { %3166 = vmatprep.subr.bf16.mxu1 %v4231_v54  ;;  %v2262_v54 = vld [vmem:[%s5174_s3 + $0x250] sm:$0xff]  ;;  %v4321_v10 = vpack.c.bf16 %v2281_v42, %v2280_v47  ;;  %v2283_v47 = vld [vmem:[%s5174_s3 + $0x2f8] sm:$0xff] }
 0x121   : > { %3136 = vmatpush3.bf16.msra.mxu0 %v4240_v60  ;;  %v4312_v55 = vpack.c.bf16 %v2263_v24, %v2262_v54  ;;  %v2265_v54 = vld [vmem:[%s5174_s3 + $0x268] sm:$0xff]  ;;  %v4330_v24 = vpack.c.bf16 %v2295_v50, %v2294_v19 }
 0x122   : > { %3138 = vmatprep.subr.bf16.mxu0 %v4249_v23  ;;  %v2297_v19 = vld [vmem:[%s5174_s3 + $0x368] sm:$0xff] }
 0x123   : > { %3168 = vmatpush3.bf16.msra.mxu1 %v4258_v32  ;;  %v2312_v32 = vld [vmem:[%s5174_s3 + $0x3e0] sm:$0xff]  ;;  %5282 = vst [vmem:[#allocation30_spill] sm:$0xff] %v4330_v24 }
 0x124   : > { %3170 = vmatprep.subr.bf16.mxu1 %v4267_v48  ;;  %v2264_v48 = vld [vmem:[%s5174_s3 + $0x260] sm:$0xff]  ;;  %v4339_v42 = vpack.c.bf16 %v2313_v20, %v2312_v32  ;;  %v2315_v32 = vld [vmem:[%s5174_s3 + $0x3f8] sm:$0xff]  ;;  %v4357_v20 = vpack.c.bf16 %v2283_v47, %v2282_v9  ;;  %v2333_v9 = vld [vmem:[%s5174_s3 + $0x488] sm:$0xff] }
 0x125   : > { %3140 = vmatpush3.bf16.msra.mxu0 %v4276_v59  ;;  %v4348_v50 = vpack.c.bf16 %v2265_v54, %v2264_v48  ;;  %v2267_v48 = vld [vmem:[%s5174_s3 + $0x278] sm:$0xff]  ;;  %v4366_v54 = vpack.c.bf16 %v2297_v19, %v2296_v46 }
 0x126   : > { %3142 = vmatprep.subr.bf16.mxu0 %v4285_v12  ;;  %5283 = vst [vmem:[#allocation31_spill] sm:$0xff] %v4339_v42  ;;  %v2299_v46 = vld [vmem:[%s5174_s3 + $0x378] sm:$0xff] }
 0x127   : > { %3172 = vmatpush3.bf16.msra.mxu1 %v4294_v30  ;;  %v2314_v30 = vld [vmem:[%s5174_s3 + $0x3f0] sm:$0xff]  ;;  %5284 = vst [vmem:[#allocation32_spill] sm:$0xff] %v4366_v54 }
 0x128   : > { %3174 = vmatprep.subr.bf16.mxu1 %v4303_v43  ;;  %v2266_v43 = vld [vmem:[%s5174_s3 + $0x270] sm:$0xff]  ;;  %v4375_v47 = vpack.c.bf16 %v2315_v32, %v2314_v30  ;;  %v2365_v30 = vld [vmem:[%s5174_s3 + $0x588] sm:$0xff]  ;;  %v4393_v32 = vpack.c.bf16 %v2333_v9, %v2332_v34  ;;  %v2335_v34 = vld [vmem:[%s5174_s3 + $0x498] sm:$0xff] }
 0x129   : > { %3144 = vmatpush3.bf16.msra.mxu0 %v4312_v55  ;;  %v4384_v19 = vpack.c.bf16 %v2267_v48, %v2266_v43  ;;  %v2317_v43 = vld [vmem:[%s5174_s3 + $0x408] sm:$0xff]  ;;  %v4402_v48 = vpack.c.bf16 %v2299_v46, %v2298_v44 }
 0x12a   : > { %3146 = vmatprep.subr.bf16.mxu0 %v4321_v10  ;;  %5285 = vst [vmem:[#allocation33_spill] sm:$0xff] %v4375_v47  ;;  %v2349_v44 = vld [vmem:[%s5174_s3 + $0x508] sm:$0xff] }
 0x12b   : > { %3176 = vmatpush3.bf16.msra.mxu1 %v4330_v24  ;;  %v2364_v24 = vld [vmem:[%s5174_s3 + $0x580] sm:$0xff]  ;;  %5286 = vst [vmem:[#allocation34_spill] sm:$0xff] %v4402_v48  ;;  %v4440_v11 = vpack.c.bf16 %v2349_v44, %v2348_v31  ;;  %v2350_v31 = vld [vmem:[%s5174_s3 + $0x510] sm:$0xff]  ;;  %v2351_v44 = vld [vmem:[%s5174_s3 + $0x518] sm:$0xff] }
 0x12c   : > { %3178 = vmatprep.subr.bf16.mxu1 %v4339_v42  ;;  %v2316_v42 = vld [vmem:[%s5174_s3 + $0x400] sm:$0xff]  ;;  %v4411_v9 = vpack.c.bf16 %v2365_v30, %v2364_v24  ;;  %v2367_v24 = vld [vmem:[%s5174_s3 + $0x598] sm:$0xff]  ;;  %v773_v30 = vrot.slane %v4114_v5, 2 }
 0x12d   : > { %3148 = vmatpush3.bf16.msra.mxu0 %v4348_v50  ;;  %v4420_v46 = vpack.c.bf16 %v2317_v43, %v2316_v42  ;;  %v2319_v42 = vld [vmem:[%s5174_s3 + $0x418] sm:$0xff]  ;;  %v990_v43 = vrot.slane %v4127_v13, 4  ;;  %5288 = vst [vmem:[#allocation36_spill] sm:$0xff] %v4440_v11 }
 0x12e   : > { %3150 = vmatprep.subr.bf16.mxu0 %v4357_v20  ;;  %5287 = vst [vmem:[#allocation35_spill] sm:$0xff] %v4411_v9 }
 0x12f   : > { %3180 = vmatpush3.bf16.msra.mxu1 %v4366_v54  ;;  %v2366_v54 = vld [vmem:[%s5174_s3 + $0x590] sm:$0xff] }
 0x130   : > { %3182 = vmatprep.subr.bf16.mxu1 %v4375_v47  ;;  %v4430_v47 = vpack.c.bf16 %v2335_v34, %v2334_v35  ;;  %v2337_v35 = vld [vmem:[%s5174_s3 + $0x4a8] sm:$0xff]  ;;  %v881_v34 = vrot.slane %v4114_v5, 3  ;;  %v4450_v57 = vpack.c.bf16 %v2367_v24, %v2366_v54  ;;  %v2368_v54 = vld [vmem:[%s5174_s3 + $0x5a0] sm:$0xff] }
 0x131   : > { %3152 = vmatpush3.bf16.msra.mxu0 %v4384_v19  ;;  %v2369_v24 = vld [vmem:[%s5174_s3 + $0x5a8] sm:$0xff] }
 0x132   : > { %3186 = vmatprep.subr.bf16.mxu0 %v4393_v32  ;;  %5289 = vst [vmem:[#allocation37_spill] sm:$0xff] %v4450_v57 }
 0x133   : > { %3184 = vmatpush3.bf16.msra.mxu1 %v4402_v48  ;;  %v1098_v48 = vrot.slane %v4127_v13, 5 }
 0x134   : > { %842 = vmatmul.mubr.f32.vlgmr.msra.gmra.mrb[4].mxu0 %v773_v30  ;;  %3218 = vmatprep.subr.bf16.mxu1 %v4411_v9  ;;  %v4460_v30 = vpack.c.bf16 %v2319_v42, %v2318_v17  ;;  %v4469_v9 = vpack.c.bf16 %v2337_v35, %v2336_v63  ;;  %v2321_v17 = vld [vmem:[%s5174_s3 + $0x428] sm:$0xff]  ;;  %v4478_v42 = vpack.c.bf16 %v2351_v44, %v2350_v31  ;;  %v2339_v63 = vld [vmem:[%s5174_s3 + $0x4b8] sm:$0xff]  ;;  %v2370_v44 = vld [vmem:[%s5174_s3 + $0x5b0] sm:$0xff] }
 0x135   : > { %3188 = vmatpush3.bf16.msra.mxu0 %v4420_v46  ;;  %1057 = vmatprep.mubr.f32.mxu0 %v990_v43  ;;  %v2320_v43 = vld [vmem:[%s5174_s3 + $0x420] sm:$0xff]  ;;  %v4487_v35 = vpack.c.bf16 %v2369_v24, %v2368_v54  ;;  %v2371_v54 = vld [vmem:[%s5174_s3 + $0x5b8] sm:$0xff] }
 0x136   : > { %950 = vmatmul.mubr.f32.vlgmr.msra.gmra.mrb[4].mxu1 %v881_v34  ;;  %3190 = vmatprep.subr.bf16.mxu0 %v4430_v47  ;;  %5290 = vst [vmem:[#allocation38_spill] sm:$0xff] %v4478_v42  ;;  %v2338_v34 = vld [vmem:[%s5174_s3 + $0x4b0] sm:$0xff]  ;;  %v4496_v31 = vpack.c.bf16 %v2321_v17, %v2320_v43  ;;  %v2323_v43 = vld [vmem:[%s5174_s3 + $0x438] sm:$0xff] }
 0x137   : > { %3220 = vmatpush3.bf16.msra.mxu1 %v4440_v11  ;;  %1165 = vmatprep.mubr.f32.mxu1 %v1098_v48  ;;  %5291 = vst [vmem:[#allocation39_spill] sm:$0xff] %v4487_v35  ;;  %v2353_v48 = vld [vmem:[%s5174_s3 + $0x528] sm:$0xff]  ;;  %v4505_v24 = vpack.c.bf16 %v2339_v63, %v2338_v34  ;;  %v2340_v11 = vld [vmem:[%s5174_s3 + $0x4c0] sm:$0xff]  ;;  %v4523_v63 = vpack.c.bf16 %v2371_v54, %v2370_v44 }
 0x138   : > { %3222 = vmatprep.subr.bf16.mxu1 %v4450_v57  ;;  %v2322_v57 = vld [vmem:[%s5174_s3 + $0x430] sm:$0xff]  ;;  %v4514_v17 = vpack.c.bf16 %v2353_v48, %v2352_v52  ;;  %v2341_v34 = vld [vmem:[%s5174_s3 + $0x4c8] sm:$0xff]  ;;  %v2355_v52 = vld [vmem:[%s5174_s3 + $0x538] sm:$0xff] }
 0x139   : > { %3192 = vmatpush3.bf16.msra.mxu0 %v4460_v30  ;;  %5293 = vst [vmem:[#allocation41_spill] sm:$0xff] %v4523_v63  ;;  %v4532_v48 = vpack.c.bf16 %v2323_v43, %v2322_v57  ;;  %v2373_v44 = vld [vmem:[%s5174_s3 + $0x5c8] sm:$0xff]  ;;  %v4541_v54 = vpack.c.bf16 %v2341_v34, %v2340_v11  ;;  %v4550_v43 = vpack.c.bf16 %v2355_v52, %v2354_v45  ;;  %v2343_v11 = vld [vmem:[%s5174_s3 + $0x4d8] sm:$0xff] }
 0x13a   : > { %3194 = vmatprep.subr.bf16.mxu0 %v4469_v9  ;;  %5292 = vst [vmem:[#allocation40_spill] sm:$0xff] %v4514_v17  ;;  %v2325_v57 = vld [vmem:[%s5174_s3 + $0x448] sm:$0xff] }
 0x13b   : > { %3224 = vmatpush3.bf16.msra.mxu1 %v4478_v42  ;;  %v2372_v42 = vld [vmem:[%s5174_s3 + $0x5c0] sm:$0xff]  ;;  %5294 = vst [vmem:[#allocation42_spill] sm:$0xff] %v4550_v43  ;;  %v2357_v45 = vld [vmem:[%s5174_s3 + $0x548] sm:$0xff] }
 0x13c   : > { %3226 = vmatprep.subr.bf16.mxu1 %v4487_v35  ;;  %v2324_v35 = vld [vmem:[%s5174_s3 + $0x440] sm:$0xff]  ;;  %v4559_v34 = vpack.c.bf16 %v2373_v44, %v2372_v42  ;;  %v2375_v42 = vld [vmem:[%s5174_s3 + $0x5d8] sm:$0xff]  ;;  %v4577_v44 = vpack.c.bf16 %v2343_v11, %v2342_v40  ;;  %v2345_v40 = vld [vmem:[%s5174_s3 + $0x4e8] sm:$0xff] }
 0x13d   : > { %3196 = vmatpush3.bf16.msra.mxu0 %v4496_v31  ;;  %v4568_v52 = vpack.c.bf16 %v2325_v57, %v2324_v35  ;;  %v2327_v35 = vld [vmem:[%s5174_s3 + $0x458] sm:$0xff]  ;;  %v4586_v57 = vpack.c.bf16 %v2357_v45, %v2356_v33 }
 0x13e   : > { %3198 = vmatprep.subr.bf16.mxu0 %v4505_v24  ;;  %5295 = vst [vmem:[#allocation43_spill] sm:$0xff] %v4559_v34  ;;  %v2359_v33 = vld [vmem:[%s5174_s3 + $0x558] sm:$0xff] }
 0x13f   : > { %3228 = vmatpush3.bf16.msra.mxu1 %v4514_v17  ;;  %v2374_v17 = vld [vmem:[%s5174_s3 + $0x5d0] sm:$0xff]  ;;  %5296 = vst [vmem:[#allocation44_spill] sm:$0xff] %v4586_v57 }
 0x140   : > { %3230 = vmatprep.subr.bf16.mxu1 %v4523_v63  ;;  %v2326_v63 = vld [vmem:[%s5174_s3 + $0x450] sm:$0xff]  ;;  %v4595_v11 = vpack.c.bf16 %v2375_v42, %v2374_v17  ;;  %v2377_v17 = vld [vmem:[%s5174_s3 + $0x5e8] sm:$0xff]  ;;  %v4613_v42 = vpack.c.bf16 %v2345_v40, %v2344_v28  ;;  %v2347_v28 = vld [vmem:[%s5174_s3 + $0x4f8] sm:$0xff] }
 0x141   : > { %3200 = vmatpush3.bf16.msra.mxu0 %v4532_v48  ;;  %v4604_v45 = vpack.c.bf16 %v2327_v35, %v2326_v63  ;;  %v2329_v63 = vld [vmem:[%s5174_s3 + $0x468] sm:$0xff]  ;;  %v4622_v35 = vpack.c.bf16 %v2359_v33, %v2358_v21 }
 0x142   : > { %3202 = vmatprep.subr.bf16.mxu0 %v4541_v54  ;;  %5297 = vst [vmem:[#allocation45_spill] sm:$0xff] %v4595_v11  ;;  %5299 = vst [vmem:[#allocation47_spill] sm:$0xff] %v4613_v42  ;;  %v2361_v21 = vld [vmem:[%s5174_s3 + $0x568] sm:$0xff] }
 0x143   : > { %3232 = vmatpush3.bf16.msra.mxu1 %v4550_v43  ;;  %5298 = vst [vmem:[#allocation46_spill] sm:$0xff] %v4604_v45  ;;  %v2376_v43 = vld [vmem:[%s5174_s3 + $0x5e0] sm:$0xff]  ;;  %5300 = vst [vmem:[#allocation48_spill] sm:$0xff] %v4622_v35 }
 0x144   : > { %3234 = vmatprep.subr.bf16.mxu1 %v4559_v34  ;;  %v2328_v34 = vld [vmem:[%s5174_s3 + $0x460] sm:$0xff]  ;;  %v4631_v40 = vpack.c.bf16 %v2377_v17, %v2376_v43  ;;  %v2379_v43 = vld [vmem:[%s5174_s3 + $0x5f8] sm:$0xff]  ;;  %v4649_v17 = vpack.c.bf16 %v2347_v28, %v2346_v15  ;;  %v2397_v15 = vld [vmem:[%s5174_s3 + $0x688] sm:$0xff] }
 0x145   : > { %3204 = vmatpush3.bf16.msra.mxu0 %v4568_v52  ;;  %v4640_v33 = vpack.c.bf16 %v2329_v63, %v2328_v34  ;;  %v2331_v34 = vld [vmem:[%s5174_s3 + $0x478] sm:$0xff]  ;;  %v4658_v63 = vpack.c.bf16 %v2361_v21, %v2360_v8 }
 0x146   : > { %3206 = vmatprep.subr.bf16.mxu0 %v4577_v44  ;;  %5301 = vst [vmem:[#allocation49_spill] sm:$0xff] %v4631_v40  ;;  %5303 = vst [vmem:[#allocation51_spill] sm:$0xff] %v4649_v17  ;;  %v2363_v8 = vld [vmem:[%s5174_s3 + $0x578] sm:$0xff] }
 0x147   : > { %3236 = vmatpush3.bf16.msra.mxu1 %v4586_v57  ;;  %5302 = vst [vmem:[#allocation50_spill] sm:$0xff] %v4640_v33  ;;  %v2378_v57 = vld [vmem:[%s5174_s3 + $0x5f0] sm:$0xff]  ;;  %5304 = vst [vmem:[#allocation52_spill] sm:$0xff] %v4658_v63 }
 0x148   : > { %3238 = vmatprep.subr.bf16.mxu1 %v4595_v11  ;;  %v2330_v11 = vld [vmem:[%s5174_s3 + $0x470] sm:$0xff]  ;;  %v4667_v28 = vpack.c.bf16 %v2379_v43, %v2378_v57  ;;  %v2429_v57 = vld [vmem:[%s5174_s3 + $0x788] sm:$0xff]  ;;  %v4685_v43 = vpack.c.bf16 %v2397_v15, %v2396_v3  ;;  %v2399_v3 = vld [vmem:[%s5174_s3 + $0x698] sm:$0xff] }
 0x149   : > { %3208 = vmatpush3.bf16.msra.mxu0 %v4604_v45  ;;  %v4676_v21 = vpack.c.bf16 %v2331_v34, %v2330_v11  ;;  %v2381_v11 = vld [vmem:[%s5174_s3 + $0x608] sm:$0xff]  ;;  %v4694_v34 = vpack.c.bf16 %v2363_v8, %v2362_v2 }
 0x14a   : > { %3210 = vmatprep.subr.bf16.mxu0 %v4613_v42  ;;  %5305 = vst [vmem:[#allocation53_spill] sm:$0xff] %v4667_v28  ;;  %5307 = vst [vmem:[#allocation55_spill] sm:$0xff] %v4685_v43  ;;  %v2413_v2 = vld [vmem:[%s5174_s3 + $0x708] sm:$0xff] }
 0x14b   : > { %3240 = vmatpush3.bf16.msra.mxu1 %v4622_v35  ;;  %5306 = vst [vmem:[#allocation54_spill] sm:$0xff] %v4676_v21  ;;  %v2428_v35 = vld [vmem:[%s5174_s3 + $0x780] sm:$0xff]  ;;  %5308 = vst [vmem:[#allocation56_spill] sm:$0xff] %v4694_v34 }
 0x14c   : > { %3242 = vmatprep.subr.bf16.mxu1 %v4631_v40  ;;  %v2380_v40 = vld [vmem:[%s5174_s3 + $0x600] sm:$0xff]  ;;  %v4703_v15 = vpack.c.bf16 %v2429_v57, %v2428_v35  ;;  %v2431_v35 = vld [vmem:[%s5174_s3 + $0x798] sm:$0xff]  ;;  %v989_v57 = vrot.slane %v4114_v5, 4 }
 0x14d   : > { %3212 = vmatpush3.bf16.msra.mxu0 %v4640_v33  ;;  %v2398_v33 = vld [vmem:[%s5174_s3 + $0x690] sm:$0xff]  ;;  %v4712_v8 = vpack.c.bf16 %v2381_v11, %v2380_v40  ;;  %v2383_v40 = vld [vmem:[%s5174_s3 + $0x618] sm:$0xff]  ;;  %v1206_v11 = vrot.slane %v4127_v13, 6 }
 0x14e   : > { %3214 = vmatprep.subr.bf16.mxu0 %v4649_v17  ;;  %5309 = vst [vmem:[#allocation57_spill] sm:$0xff] %v4703_v15  ;;  %v2412_v17 = vld [vmem:[%s5174_s3 + $0x700] sm:$0xff] }
 0x14f   : > { %3244 = vmatpush3.bf16.msra.mxu1 %v4658_v63  ;;  %v2430_v63 = vld [vmem:[%s5174_s3 + $0x790] sm:$0xff]  ;;  %v4732_v42 = vpack.c.bf16 %v2413_v2, %v2412_v17  ;;  %v2415_v2 = vld [vmem:[%s5174_s3 + $0x718] sm:$0xff] }
 0x150   : > { %3246 = vmatprep.subr.bf16.mxu1 %v4667_v28  ;;  %v4722_v28 = vpack.c.bf16 %v2399_v3, %v2398_v33  ;;  %v2401_v33 = vld [vmem:[%s5174_s3 + $0x6a8] sm:$0xff]  ;;  %v1097_v3 = vrot.slane %v4114_v5, 5  ;;  %v4742_v45 = vpack.c.bf16 %v2431_v35, %v2430_v63  ;;  %v2414_v17 = vld [vmem:[%s5174_s3 + $0x710] sm:$0xff]  ;;  %v2432_v63 = vld [vmem:[%s5174_s3 + $0x7a0] sm:$0xff] }
 0x151   : > { %3216 = vmatpush3.bf16.msra.mxu0 %v4676_v21  ;;  %v2382_v21 = vld [vmem:[%s5174_s3 + $0x610] sm:$0xff]  ;;  %5310 = vst [vmem:[#allocation58_spill] sm:$0xff] %v4732_v42  ;;  %v2433_v35 = vld [vmem:[%s5174_s3 + $0x7a8] sm:$0xff] }
 0x152   : > { %3250 = vmatprep.subr.bf16.mxu0 %v4685_v43  ;;  %v2400_v43 = vld [vmem:[%s5174_s3 + $0x6a0] sm:$0xff]  ;;  %5311 = vst [vmem:[#allocation59_spill] sm:$0xff] %v4742_v45 }
 0x153   : > { %3248 = vmatpush3.bf16.msra.mxu1 %v4694_v34  ;;  %v1314_v34 = vrot.slane %v4127_v13, 7  ;;  %v2385_v13 = vld [vmem:[%s5174_s3 + $0x628] sm:$0xff] }
 0x154   : > { %1058 = vmatmul.mubr.f32.vlgmr.msra.gmra.mrb[6].mxu0 %v989_v57  ;;  %3282 = vmatprep.subr.bf16.mxu1 %v4703_v15  ;;  %v4752_v57 = vpack.c.bf16 %v2383_v40, %v2382_v21  ;;  %v4761_v15 = vpack.c.bf16 %v2401_v33, %v2400_v43  ;;  %v4770_v21 = vpack.c.bf16 %v2415_v2, %v2414_v17  ;;  %v2402_v40 = vld [vmem:[%s5174_s3 + $0x6b0] sm:$0xff]  ;;  %v2403_v43 = vld [vmem:[%s5174_s3 + $0x6b8] sm:$0xff] }
 0x155   : > { %3252 = vmatpush3.bf16.msra.mxu0 %v4712_v8  ;;  %1273 = vmatprep.mubr.f32.mxu0 %v1206_v11  ;;  %v2384_v11 = vld [vmem:[%s5174_s3 + $0x620] sm:$0xff]  ;;  %v4779_v33 = vpack.c.bf16 %v2433_v35, %v2432_v63  ;;  %v2434_v2 = vld [vmem:[%s5174_s3 + $0x7b0] sm:$0xff]  ;;  %v2435_v63 = vld [vmem:[%s5174_s3 + $0x7b8] sm:$0xff]  ;;  %v4797_v35 = vpack.c.bf16 %v2403_v43, %v2402_v40 }
 0x156   : > { %1166 = vmatmul.mubr.f32.vlgmr.msra.gmra.mrb[6].mxu1 %v1097_v3  ;;  %3254 = vmatprep.subr.bf16.mxu0 %v4722_v28  ;;  %5312 = vst [vmem:[#allocation60_spill] sm:$0xff] %v4761_v15  ;;  %5313 = vst [vmem:[#allocation61_spill] sm:$0xff] %v4770_v21  ;;  %v2416_v3 = vld [vmem:[%s5174_s3 + $0x720] sm:$0xff]  ;;  %v4788_v17 = vpack.c.bf16 %v2385_v13, %v2384_v11  ;;  %v2387_v11 = vld [vmem:[%s5174_s3 + $0x638] sm:$0xff]  ;;  %v4815_v43 = vpack.c.bf16 %v2435_v63, %v2434_v2 }
 0x157   : > { %3284 = vmatpush3.bf16.msra.mxu1 %v4732_v42  ;;  %1381 = vmatprep.mubr.f32.mxu1 %v1314_v34  ;;  %5314 = vst [vmem:[#allocation62_spill] sm:$0xff] %v4779_v33  ;;  %v2417_v34 = vld [vmem:[%s5174_s3 + $0x728] sm:$0xff]  ;;  %5316 = vst [vmem:[#allocation64_spill] sm:$0xff] %v4797_v35  ;;  %v2404_v42 = vld [vmem:[%s5174_s3 + $0x6c0] sm:$0xff] }
 0x158   : > { %3286 = vmatprep.subr.bf16.mxu1 %v4742_v45  ;;  %5315 = vst [vmem:[#allocation63_spill] sm:$0xff] %v4788_v17  ;;  %v2386_v45 = vld [vmem:[%s5174_s3 + $0x630] sm:$0xff]  ;;  %v4806_v13 = vpack.c.bf16 %v2417_v34, %v2416_v3  ;;  %v2405_v40 = vld [vmem:[%s5174_s3 + $0x6c8] sm:$0xff]  ;;  %5318 = vst [vmem:[#allocation66_spill] sm:$0xff] %v4815_v43 }
 0x159   : > { %3256 = vmatpush3.bf16.msra.mxu0 %v4752_v57  ;;  %v2419_v3 = vld [vmem:[%s5174_s3 + $0x738] sm:$0xff]  ;;  %v4824_v34 = vpack.c.bf16 %v2387_v11, %v2386_v45  ;;  %v2437_v2 = vld [vmem:[%s5174_s3 + $0x7c8] sm:$0xff]  ;;  %v4833_v63 = vpack.c.bf16 %v2405_v40, %v2404_v42 }
 0x15a   : > { %3258 = vmatprep.subr.bf16.mxu0 %v4761_v15  ;;  %5317 = vst [vmem:[#allocation65_spill] sm:$0xff] %v4806_v13  ;;  %v2418_v15 = vld [vmem:[%s5174_s3 + $0x730] sm:$0xff]  ;;  %v2389_v45 = vld [vmem:[%s5174_s3 + $0x648] sm:$0xff]  ;;  %v2407_v42 = vld [vmem:[%s5174_s3 + $0x6d8] sm:$0xff] }
 0x15b   : > { %3288 = vmatpush3.bf16.msra.mxu1 %v4770_v21  ;;  %5319 = vst [vmem:[#allocation67_spill] sm:$0xff] %v4824_v34  ;;  %v2436_v21 = vld [vmem:[%s5174_s3 + $0x7c0] sm:$0xff]  ;;  %5320 = vst [vmem:[#allocation68_spill] sm:$0xff] %v4833_v63  ;;  %v4842_v11 = vpack.c.bf16 %v2419_v3, %v2418_v15  ;;  %v2421_v15 = vld [vmem:[%s5174_s3 + $0x748] sm:$0xff] }
 0x15c   : > { %3290 = vmatprep.subr.bf16.mxu1 %v4779_v33  ;;  %v2388_v33 = vld [vmem:[%s5174_s3 + $0x640] sm:$0xff]  ;;  %v4851_v40 = vpack.c.bf16 %v2437_v2, %v2436_v21  ;;  %v2439_v21 = vld [vmem:[%s5174_s3 + $0x7d8] sm:$0xff] }
 0x15d   : > { %3260 = vmatpush3.bf16.msra.mxu0 %v4788_v17  ;;  %5321 = vst [vmem:[#allocation69_spill] sm:$0xff] %v4842_v11  ;;  %v2406_v17 = vld [vmem:[%s5174_s3 + $0x6d0] sm:$0xff]  ;;  %v4860_v3 = vpack.c.bf16 %v2389_v45, %v2388_v33  ;;  %v2391_v33 = vld [vmem:[%s5174_s3 + $0x658] sm:$0xff] }
 0x15e   : > { %3262 = vmatprep.subr.bf16.mxu0 %v4797_v35  ;;  %5322 = vst [vmem:[#allocation70_spill] sm:$0xff] %v4851_v40  ;;  %v2420_v35 = vld [vmem:[%s5174_s3 + $0x740] sm:$0xff]  ;;  %v4869_v2 = vpack.c.bf16 %v2407_v42, %v2406_v17  ;;  %v2409_v17 = vld [vmem:[%s5174_s3 + $0x6e8] sm:$0xff] }
 0x15f   : > { %3292 = vmatpush3.bf16.msra.mxu1 %v4806_v13  ;;  %5323 = vst [vmem:[#allocation71_spill] sm:$0xff] %v4860_v3  ;;  %v2438_v13 = vld [vmem:[%s5174_s3 + $0x7d0] sm:$0xff]  ;;  %v4878_v45 = vpack.c.bf16 %v2421_v15, %v2420_v35  ;;  %v2423_v35 = vld [vmem:[%s5174_s3 + $0x758] sm:$0xff] }
 0x160   : > { %3294 = vmatprep.subr.bf16.mxu1 %v4815_v43  ;;  %5324 = vst [vmem:[#allocation72_spill] sm:$0xff] %v4869_v2  ;;  %v2390_v43 = vld [vmem:[%s5174_s3 + $0x650] sm:$0xff]  ;;  %v4887_v42 = vpack.c.bf16 %v2439_v21, %v2438_v13  ;;  %v2441_v13 = vld [vmem:[%s5174_s3 + $0x7e8] sm:$0xff] }
 0x161   : > { %3264 = vmatpush3.bf16.msra.mxu0 %v4824_v34  ;;  %5325 = vst [vmem:[#allocation73_spill] sm:$0xff] %v4878_v45  ;;  %v2408_v34 = vld [vmem:[%s5174_s3 + $0x6e0] sm:$0xff]  ;;  %v4896_v15 = vpack.c.bf16 %v2391_v33, %v2390_v43  ;;  %v2393_v43 = vld [vmem:[%s5174_s3 + $0x668] sm:$0xff] }
 0x162   : > { %3266 = vmatprep.subr.bf16.mxu0 %v4833_v63  ;;  %5326 = vst [vmem:[#allocation74_spill] sm:$0xff] %v4887_v42  ;;  %v2422_v63 = vld [vmem:[%s5174_s3 + $0x750] sm:$0xff]  ;;  %v4905_v21 = vpack.c.bf16 %v2409_v17, %v2408_v34  ;;  %v2411_v34 = vld [vmem:[%s5174_s3 + $0x6f8] sm:$0xff] }
 0x163   : > { %3296 = vmatpush3.bf16.msra.mxu1 %v4842_v11  ;;  %5327 = vst [vmem:[#allocation75_spill] sm:$0xff] %v4896_v15  ;;  %v2440_v11 = vld [vmem:[%s5174_s3 + $0x7e0] sm:$0xff]  ;;  %v4914_v33 = vpack.c.bf16 %v2423_v35, %v2422_v63  ;;  %v2425_v63 = vld [vmem:[%s5174_s3 + $0x768] sm:$0xff] }
 0x164   : > { %3298 = vmatprep.subr.bf16.mxu1 %v4851_v40  ;;  %5328 = vst [vmem:[#allocation76_spill] sm:$0xff] %v4905_v21  ;;  %v2392_v40 = vld [vmem:[%s5174_s3 + $0x660] sm:$0xff]  ;;  %v4923_v17 = vpack.c.bf16 %v2441_v13, %v2440_v11  ;;  %v2443_v11 = vld [vmem:[%s5174_s3 + $0x7f8] sm:$0xff] }
 0x165   : > { %3268 = vmatpush3.bf16.msra.mxu0 %v4860_v3  ;;  %v2410_v3 = vld [vmem:[%s5174_s3 + $0x6f0] sm:$0xff]  ;;  %v4932_v35 = vpack.c.bf16 %v2393_v43, %v2392_v40  ;;  %v2395_v40 = vld [vmem:[%s5174_s3 + $0x678] sm:$0xff] }
 0x166   : > { %3270 = vmatprep.subr.bf16.mxu0 %v4869_v2  ;;  %v2424_v2 = vld [vmem:[%s5174_s3 + $0x760] sm:$0xff]  ;;  %v4941_v13 = vpack.c.bf16 %v2411_v34, %v2410_v3  ;;  %v2426_v3 = vld [vmem:[%s5174_s3 + $0x770] sm:$0xff]  ;;  %v2427_v34 = vld [vmem:[%s5174_s3 + $0x778] sm:$0xff] }
 0x167   : > { %3300 = vmatpush3.bf16.msra.mxu1 %v4878_v45  ;;  %v2442_v45 = vld [vmem:[%s5174_s3 + $0x7f0] sm:$0xff]  ;;  %v4950_v43 = vpack.c.bf16 %v2425_v63, %v2424_v2  ;;  %v4966_v2 = vpack.c.bf16 %v2427_v34, %v2426_v3  ;;  %v1313_v63 = vrot.slane %v4114_v5, 7 }
 0x168   : > { %3302 = vmatprep.subr.bf16.mxu1 %v4887_v42  ;;  %v2394_v42 = vld [vmem:[%s5174_s3 + $0x670] sm:$0xff] }
 0x169   : > { %3272 = vmatpush3.bf16.msra.mxu0 %v4896_v15  ;;  %v4953_v15 = vpack.c.bf16 %v2443_v11, %v2442_v45  ;;  %v1205_v45 = vrot.slane %v4114_v5, 6 }
 0x16a   : > { %3274 = vmatprep.subr.bf16.mxu0 %v4905_v21  ;;  %v4962_v21 = vpack.c.bf16 %v2395_v40, %v2394_v42  ;;  %v4975_v42 = vmax.f32 %v4116_v6, 0.0  ;;  %v5336_v6 = vld [vmem:[#allocation55_spill] sm:$0xff] }
 0x16b   : > { %3304 = vmatpush3.bf16.msra.mxu1 %v4914_v33 }
 0x16c   : > { %3306 = vmatprep.subr.bf16.mxu1 %v4923_v17 }
 0x16d   : > { %3276 = vmatpush3.bf16.msra.mxu0 %v4932_v35 }
 0x16e   : > { %3278 = vmatprep.subr.bf16.mxu0 %v4941_v13 }
 0x16f   : > { %3308 = vmatpush3.bf16.msra.mxu1 %v4950_v43 }
 0x170   : > { %3310 = vmatprep.subr.bf16.mxu1 %v4953_v15 }
 0x171   : > { %3280 = vmatpush3.bf16.msra.mxu0 %v4962_v21 }
 0x173   : > { %3312 = vmatpush3.bf16.msra.mxu1 %v4966_v2 }
 0x174   : > { %1274 = vmatmul.mubr.f32.vlgmr.msra.gmra.mrb[8].mxu0 %v1205_v45  ;;  %3320 = vmatprep.subr.bf16.mxu1 %v3823_v62  ;;  %v4994_v62 = vmax.f32 %v4109_v56, 0.0  ;;  %v5335_v56 = vld [vmem:[#allocation54_spill] sm:$0xff] }
 0x176   : > { %1382 = vmatmul.mubr.f32.vlgmr.msra.gmra.mrb[8].mxu1 %v1313_v63  ;;  %v1766_v5 = vrot.slane %v4994_v62, 4 }
 0x177   : > { %3322 = vmatpush3.bf16.msra.mxu1 %v3831_v1  ;;  %1532 = vmatprep.mubr.f32.mxu1 %v4975_v42  ;;  %v1617_v1 = vrot.slane %v4975_v42, 2 }
 0x178   : > { %3324 = vmatprep.subr.bf16.mxu1 %v3838_v4  ;;  %v1616_v4 = vrot.slane %v4994_v62, 2 }
 0x17b   : > { %3326 = vmatpush3.bf16.msra.mxu1 %v3872_v14  ;;  %v1767_v14 = vrot.slane %v4975_v42, 4 }
 0x17c   : > { %3328 = vmatprep.subr.bf16.mxu1 %v3878_v16  ;;  %v1389_v16 = vld [vmem:[%s5176_s5] sm:$0xff] }
 0x17f   : > { %3330 = vmatpush3.bf16.msra.mxu1 %v3908_v27  ;;  %v1390_v27 = vld [vmem:[%s5176_s5 + $0x8] sm:$0xff] }
 0x180   : > { %3332 = vmatprep.subr.bf16.mxu1 %v3914_v29  ;;  %v3314_v29 = vpack.c.bf16 %v1390_v27, %v1389_v16 }
 0x183   : > { %3334 = vmatpush3.bf16.msra.mxu1 %v3944_v39  ;;  %v5329_v39 = vld [vmem:[#allocation46_spill] sm:$0xff] }
 0x184   : > { %3336 = vmatprep.subr.bf16.mxu1 %v3950_v41  ;;  %v3638_v41 = vmov 0.0|0.0  }
 0x185   : > { %3313 = vmatprep.subr.bf16.mxu0 %v3638_v41 }
 0x186   : > { %3315 = vmatpush3.bf16.msra.mxu0 %v3314_v29 }
 0x187   : > { %3338 = vmatpush3.bf16.msra.mxu1 %v3980_v51  ;;  %v5330_v51 = vld [vmem:[#allocation47_spill] sm:$0xff]  ;;  %3316 = vmatprep.subr.bf16.mxu0 %v3638_v41 }
 0x188   : > { %3340 = vmatprep.subr.bf16.mxu1 %v3986_v53  ;;  %v1391_v53 = vld [vmem:[%s5176_s5 + $0x10] sm:$0xff] }
 0x18b   : > { %3342 = vmatpush3.bf16.msra.mxu1 %v4010_v61  ;;  %v1392_v61 = vld [vmem:[%s5176_s5 + $0x18] sm:$0xff] }
 0x18c   : > { %3344 = vmatprep.subr.bf16.mxu1 %v4016_v0  ;;  %v3317_v0 = vpack.c.bf16 %v1392_v61, %v1391_v53  ;;  %v5347_v53 = vld [vmem:[#allocation5_spill] sm:$0xff]  ;;  %v5348_v61 = vld [vmem:[#allocation6_spill] sm:$0xff] }
 0x18e   : > { %3318 = vmatpush3.bf16.msra.mxu0 %v3317_v0 }
 0x18f   : > { %3346 = vmatpush3.bf16.msra.mxu1 %v4026_v7  ;;  %v5331_v7 = vld [vmem:[#allocation50_spill] sm:$0xff] }
 0x190   : > { %3348 = vmatprep.subr.bf16.mxu1 %v4054_v22  ;;  %v5332_v22 = vld [vmem:[#allocation51_spill] sm:$0xff] }
 0x193   : > { %3350 = vmatpush3.bf16.msra.mxu1 %v4063_v25  ;;  %v5333_v25 = vmov 0.0  }
 0x194   : > { %3384 = vmatprep.subr.bf16.mxu1 %v4090_v38  ;;  %3027 = vmatprep.mubr.msk.f32.mxu0 %vm3639_vm2, %v5333_v25  ;;  %v5334_v38 = vld [vmem:[#allocation3_spill] sm:$0xff] }
 0x195   : > { %3352 = vmatprep.subr.bf16.mxu0 %v5334_v38  ;;  %v5353_v38 = vld [vmem:[#allocation11_spill] sm:$0xff] }
 0x196   : > { %1533 = vmatmul.mubr.f32.vlgmr.msra.gmra.mrb[10].mxu1 %v4994_v62 }
 0x197   : > { %3386 = vmatpush3.bf16.msra.mxu1 %v4129_v18  ;;  %1684 = vmatprep.mubr.f32.mxu1 %v1617_v1  ;;  %v1917_v18 = vrot.slane %v4975_v42, 6 }
 0x198   : > { %3388 = vmatprep.subr.bf16.mxu1 %v4148_v36  ;;  %v5337_v36 = vld [vmem:[#allocation60_spill] sm:$0xff] }
 0x19b   : > { %3390 = vmatpush3.bf16.msra.mxu1 %v4167_v49  ;;  %v5338_v49 = vld [vmem:[#allocation63_spill] sm:$0xff] }
 0x19c   : > { %3392 = vmatprep.subr.bf16.mxu1 %v4176_v58  ;;  %v5339_v58 = vld [vmem:[#allocation64_spill] sm:$0xff] }
 0x19f   : > { %3394 = vmatpush3.bf16.msra.mxu1 %v4204_v26  ;;  %v5340_v26 = vld [vmem:[#allocation67_spill] sm:$0xff] }
 0x1a0   : > { %3396 = vmatprep.subr.bf16.mxu1 %v4213_v37  ;;  %v5341_v37 = vld [vmem:[#allocation68_spill] sm:$0xff] }
 0x1a3   : > { %3398 = vmatpush3.bf16.msra.mxu1 %v4240_v60  ;;  %v5342_v60 = vld [vmem:[#allocation71_spill] sm:$0xff] }
 0x1a4   : > { %3400 = vmatprep.subr.bf16.mxu1 %v4249_v23 }
 0x1a7   : > { %3402 = vmatpush3.bf16.msra.mxu1 %v4276_v59  ;;  %v5062_v59 = vld [vmem:[%s5175_s4] sm:$0x1] }
 0x1a8   : > { %3404 = vmatprep.subr.bf16.mxu1 %v4285_v12 }
 0x1ab   : > { %3406 = vmatpush3.bf16.msra.mxu1 %v4312_v55  ;;  %v5343_v55 = vld [vmem:[#allocation72_spill] sm:$0xff] }
 0x1ac   : > { %3408 = vmatprep.subr.bf16.mxu1 %v4321_v10 }
 0x1af   : > { %3410 = vmatpush3.bf16.msra.mxu1 %v4348_v50 }
 0x1b0   : > { %3412 = vmatprep.subr.bf16.mxu1 %v4357_v20 }
 0x1b3   : > { %3414 = vmatpush3.bf16.msra.mxu1 %v4384_v19 }
 0x1b4   : > { %3448 = vmatprep.subr.bf16.mxu1 %v4393_v32  ;;  %v5344_v32 = vld [vmem:[#allocation75_spill] sm:$0xff] }
 0x1b6   : > { %1685 = vmatmul.mubr.f32.vlgmr.msra.gmra.mrb[12].mxu1 %v1616_v4 }
 0x1b7   : > { %3450 = vmatpush3.bf16.msra.mxu1 %v4420_v46  ;;  %1834 = vmatprep.mubr.f32.mxu1 %v1767_v14 }
 0x1b8   : > { %3452 = vmatprep.subr.bf16.mxu1 %v4430_v47 }
 0x1bb   : > { %3454 = vmatpush3.bf16.msra.mxu1 %v4460_v30  ;;  %v1916_v30 = vrot.slane %v4994_v62, 6 }
 0x1bc   : > { %3456 = vmatprep.subr.bf16.mxu1 %v4469_v9  ;;  %v5345_v9 = vld [vmem:[#allocation76_spill] sm:$0xff] }
 0x1bf   : > { %3458 = vmatpush3.bf16.msra.mxu1 %v4496_v31 }
 0x1c0   : > { %3460 = vmatprep.subr.bf16.mxu1 %v4505_v24 }
 0x1c3   : > { %3462 = vmatpush3.bf16.msra.mxu1 %v4532_v48 }
 0x1c4   : > { %3464 = vmatprep.subr.bf16.mxu1 %v4541_v54 }
 0x1c7   : > { %3466 = vmatpush3.bf16.msra.mxu1 %v4568_v52 }
 0x1c8   : > { %3468 = vmatprep.subr.bf16.mxu1 %v4577_v44 }
 0x1cb   : > { %3470 = vmatpush3.bf16.msra.mxu1 %v5329_v39 }
 0x1cc   : > { %3472 = vmatprep.subr.bf16.mxu1 %v5330_v51  ;;  %v5346_v51 = vld [vmem:[#allocation4_spill] sm:$0xff] }
 0x1cf   : > { %3474 = vmatpush3.bf16.msra.mxu1 %v5331_v7  ;;  %v5350_v7 = vld [vmem:[#allocation8_spill] sm:$0xff] }
 0x1d0   : > { %3476 = vmatprep.subr.bf16.mxu1 %v5332_v22  ;;  %v5351_v22 = vld [vmem:[#allocation9_spill] sm:$0xff] }
 0x1d3   : > { %3478 = vmatpush3.bf16.msra.mxu1 %v5335_v56  ;;  %v5354_v56 = vld [vmem:[#allocation12_spill] sm:$0xff] }
 0x1d4   : > { %3512 = vmatprep.subr.bf16.mxu1 %v5336_v6  ;;  %v5356_v6 = vld [vmem:[#allocation14_spill] sm:$0xff] }
 0x1d6   : > { %1835 = vmatmul.mubr.f32.vlgmr.msra.gmra.mrb[14].mxu1 %v1766_v5  ;;  %v5355_v5 = vld [vmem:[#allocation13_spill] sm:$0xff] }
 0x1d7   : > { %3514 = vmatpush3.bf16.msra.mxu1 %v4712_v8  ;;  %1984 = vmatprep.mubr.f32.mxu1 %v1917_v18  ;;  %v5357_v18 = vld [vmem:[#allocation15_spill] sm:$0xff] }
 0x1d8   : > { %3516 = vmatprep.subr.bf16.mxu1 %v4722_v28 }
 0x1db   : > { %3518 = vmatpush3.bf16.msra.mxu1 %v4752_v57 }
 0x1dc   : > { %3520 = vmatprep.subr.bf16.mxu1 %v5337_v36 }
 0x1df   : > { %3522 = vmatpush3.bf16.msra.mxu1 %v5338_v49  ;;  %v5358_v49 = vld [vmem:[#allocation16_spill] sm:$0xff] }
 0x1e0   : > { %3524 = vmatprep.subr.bf16.mxu1 %v5339_v58 }
 0x1e3   : > { %3526 = vmatpush3.bf16.msra.mxu1 %v5340_v26 }
 0x1e4   : > { %3528 = vmatprep.subr.bf16.mxu1 %v5341_v37  ;;  %v5359_v37 = vld [vmem:[#allocation17_spill] sm:$0xff] }
 0x1e7   : > { %3530 = vmatpush3.bf16.msra.mxu1 %v5342_v60  ;;  %v2481_v23 = vpop.f32.mrb[2].mxu0  ;;  %v5360_v60 = vld [vmem:[#allocation18_spill] sm:$0xff] }
 0x1e8   : > { %v2482_v12 = vpop.f32.mrb[3].mxu0  ;;  %3532 = vmatprep.subr.bf16.mxu1 %v5343_v55  ;;  %v1692_v55 = vrot.slane %v4975_v42, 3 }
 0x1e9   : > { %v2483_v10 = vadd.f32 %v2482_v12, %v2481_v23  ;;  %v2516_v50 = vpop.f32.mrb[2].mxu1  ;;  %v1541_v23 = vrot.slane %v4994_v62, 1  ;;  %v5361_v12 = vld [vmem:[#allocation19_spill] sm:$0xff] }
 0x1ea   : > { %v2517_v20 = vpop.f32.mrb[3].mxu1 }
 0x1eb   : > { %v629_v47 = vadd.f32 %v2483_v10, %v5062_v59  ;;  %v2518_v19 = vadd.f32 %v2517_v20, %v2516_v50  ;;  %3534 = vmatpush3.bf16.msra.mxu1 %v5344_v32  ;;  %v5362_v10 = vld [vmem:[#allocation20_spill] sm:$0xff]  ;;  %v5363_v50 = vld [vmem:[#allocation21_spill] sm:$0xff]  ;;  %v5364_v20 = vld [vmem:[#allocation22_spill] sm:$0xff] }
 0x1ec   : > { %3536 = vmatprep.subr.bf16.mxu1 %v5345_v9  ;;  %v5367_v32 = vld [vmem:[#allocation25_spill] sm:$0xff]  ;;  %v5368_v9 = vld [vmem:[#allocation26_spill] sm:$0xff] }
 0x1ed   : > { %v739_v46 = vadd.f32 %v2518_v19, %v629_v47  ;;  %v5365_v47 = vld [vmem:[#allocation23_spill] sm:$0xff]  ;;  %v5366_v19 = vld [vmem:[#allocation24_spill] sm:$0xff] }
 0x1ef   : > { %3538 = vmatpush3.bf16.msra.mxu1 %v4932_v35 }
 0x1f0   : > { %3540 = vmatprep.subr.bf16.mxu1 %v4941_v13 }
 0x1f3   : > { %3542 = vmatpush3.bf16.msra.mxu1 %v4962_v21 }
 0x1f4   : > { %3575 = vmatprep.subr.bf16.mxu1 %v3638_v41 }
 0x1f6   : > { %1985 = vmatmul.mubr.f32.vlgmr.msra.gmra.mrb[16].mxu1 %v1916_v30  ;;  %v5370_v30 = vld [vmem:[#allocation28_spill] sm:$0xff] }
 0x1f7   : > { %3577 = vmatpush3.bf16.msra.mxu1 %v3314_v29  ;;  %3038 = vmatprep.mubr.msk.f32.mxu1 %vm3639_vm2, %v5333_v25  ;;  %v5352_v25 = vld [vmem:[#allocation10_spill] sm:$0xff] }
 0x1f8   : > { %3578 = vmatprep.subr.bf16.mxu1 %v3638_v41  ;;  %v1542_v41 = vrot.slane %v4975_v42, 1 }
 0x1fb   : > { %3580 = vmatpush3.bf16.msra.mxu1 %v3317_v0  ;;  %v5349_v0 = vld [vmem:[#allocation7_spill] sm:$0xff] }
 0x207   : > { %v2551_v31 = vpop.f32.mrb[4].mxu0 }
 0x208   : > { %v2552_v24 = vpop.f32.mrb[5].mxu0 }
 0x209   : > { %v2553_v48 = vadd.f32 %v2552_v24, %v2551_v31  ;;  %v2586_v54 = vpop.f32.mrb[4].mxu1  ;;  %v5371_v31 = vld [vmem:[#allocation29_spill] sm:$0xff]  ;;  %v5372_v24 = vld [vmem:[#allocation30_spill] sm:$0xff] }
 0x20a   : > { %v2587_v52 = vpop.f32.mrb[5].mxu1 }
 0x20b   : > { %v847_v44 = vadd.f32 %v2553_v48, %v739_v46  ;;  %v2588_v28 = vadd.f32 %v2587_v52, %v2586_v54  ;;  %v5369_v46 = vld [vmem:[#allocation27_spill] sm:$0xff]  ;;  %v5374_v52 = vld [vmem:[#allocation32_spill] sm:$0xff] }
 0x20c   : > { %v5373_v48 = vld [vmem:[#allocation31_spill] sm:$0xff] }
 0x20d   : > { %v955_v8 = vadd.f32 %v2588_v28, %v847_v44 }
 0x227   : > { %v2621_v57 = vpop.f32.mrb[6].mxu0 }
 0x228   : > { %v2622_v21 = vpop.f32.mrb[7].mxu0 }
 0x229   : > { %v2623_v35 = vadd.f32 %v2622_v21, %v2621_v57  ;;  %v2656_v11 = vpop.f32.mrb[6].mxu1  ;;  %v5376_v57 = vld [vmem:[#allocation34_spill] sm:$0xff]  ;;  %v1691_v21 = vrot.slane %v4994_v62, 3 }
 0x22a   : > { %v2657_v13 = vpop.f32.mrb[7].mxu1 }
 0x22b   : > { %v1063_v40 = vadd.f32 %v2623_v35, %v955_v8  ;;  %v2658_v3 = vadd.f32 %v2657_v13, %v2656_v11  ;;  %v5375_v8 = vld [vmem:[#allocation33_spill] sm:$0xff]  ;;  %v5377_v35 = vld [vmem:[#allocation35_spill] sm:$0xff]  ;;  %v1842_v11 = vrot.slane %v4975_v42, 5  ;;  %v5378_v13 = vld [vmem:[#allocation36_spill] sm:$0xff] }
 0x22d   : > { %v1171_v34 = vadd.f32 %v2658_v3, %v1063_v40  ;;  %v5379_v40 = vld [vmem:[#allocation37_spill] sm:$0xff]  ;;  %v5380_v3 = vld [vmem:[#allocation38_spill] sm:$0xff] }
 0x247   : > { %v2691_v45 = vpop.f32.mrb[8].mxu0 }
 0x248   : > { %v2692_v63 = vpop.f32.mrb[9].mxu0 }
 0x249   : > { %v2693_v1 = vadd.f32 %v2692_v63, %v2691_v45  ;;  %v2726_v4 = vpop.f32.mrb[8].mxu1  ;;  %v5382_v45 = vld [vmem:[#allocation40_spill] sm:$0xff]  ;;  %v5383_v63 = vld [vmem:[#allocation41_spill] sm:$0xff] }
 0x24a   : > { %v2727_v14 = vpop.f32.mrb[9].mxu1 }
 0x24b   : > { %v1279_v16 = vadd.f32 %v2693_v1, %v1171_v34  ;;  %v2728_v27 = vadd.f32 %v2727_v14, %v2726_v4  ;;  %v5381_v34 = vld [vmem:[#allocation39_spill] sm:$0xff]  ;;  %v5384_v1 = vld [vmem:[#allocation42_spill] sm:$0xff]  ;;  %v5386_v14 = vld [vmem:[#allocation44_spill] sm:$0xff] }
 0x24c   : > { %v5385_v4 = vld [vmem:[#allocation43_spill] sm:$0xff] }
 0x24d   : > { %v1387_v29 = vadd.f32 %v2728_v27, %v1279_v16  ;;  %v5387_v16 = vld [vmem:[#allocation45_spill] sm:$0xff]  ;;  %v5388_v27 = vld [vmem:[#allocation48_spill] sm:$0xff] }
 0x24f   : > { %v1388_v39 = vmax.f32 %v1387_v29, 0.0  ;;  %v5389_v29 = vld [vmem:[#allocation49_spill] sm:$0xff] }
 0x251   : > { %3028 = vmatmul.mubr.msk.f32.vlgmr.msra.gmra.mrb[10].mxu0 %vm1394_vm3, %v1388_v39 }
 0x252   : > { %3354 = vmatpush3.bf16.msra.mxu0 %v5346_v51  ;;  %1609 = vmatprep.mubr.f32.mxu0 %v1542_v41  ;;  %v5390_v41 = vld [vmem:[#allocation52_spill] sm:$0xff] }
 0x253   : > { %3356 = vmatprep.subr.bf16.mxu0 %v5347_v53 }
 0x256   : > { %3358 = vmatpush3.bf16.msra.mxu0 %v5348_v61  ;;  %v5391_v61 = vld [vmem:[#allocation53_spill] sm:$0xff] }
 0x257   : > { %3360 = vmatprep.subr.bf16.mxu0 %v5349_v0  ;;  %v5392_v0 = vld [vmem:[#allocation56_spill] sm:$0xff] }
 0x25a   : > { %3362 = vmatpush3.bf16.msra.mxu0 %v5350_v7  ;;  %v1841_v7 = vrot.slane %v4994_v62, 5 }
 0x25b   : > { %3364 = vmatprep.subr.bf16.mxu0 %v5351_v22  ;;  %v5393_v22 = vld [vmem:[#allocation57_spill] sm:$0xff] }
 0x25e   : > { %3366 = vmatpush3.bf16.msra.mxu0 %v5352_v25  ;;  %v1992_v25 = vrot.slane %v4975_v42, 7  ;;  %v5403_v42 = vld [vmem:[#allocation74_spill] sm:$0xff] }
 0x25f   : > { %3368 = vmatprep.subr.bf16.mxu0 %v5353_v38  ;;  %v5394_v38 = vld [vmem:[#allocation58_spill] sm:$0xff] }
 0x262   : > { %3370 = vmatpush3.bf16.msra.mxu0 %v5354_v56  ;;  %v5395_v56 = vld [vmem:[#allocation59_spill] sm:$0xff] }
 0x263   : > { %3372 = vmatprep.subr.bf16.mxu0 %v5355_v5  ;;  %v5396_v5 = vld [vmem:[#allocation61_spill] sm:$0xff] }
 0x266   : > { %3374 = vmatpush3.bf16.msra.mxu0 %v5356_v6  ;;  %v5397_v6 = vld [vmem:[#allocation62_spill] sm:$0xff] }
 0x267   : > { %3376 = vmatprep.subr.bf16.mxu0 %v5357_v18  ;;  %v5398_v18 = vld [vmem:[#allocation65_spill] sm:$0xff] }
 0x269   : > { %v2766_v36 = vpop.f32.mrb[10].mxu1 }
 0x26a   : > { %3378 = vmatpush3.bf16.msra.mxu0 %v5358_v49  ;;  %v2767_v58 = vpop.f32.mrb[11].mxu1  ;;  %v5400_v49 = vld [vmem:[#allocation69_spill] sm:$0xff] }
 0x26b   : > { %v5089_v26 = vadd.f32 %v2767_v58, %v2766_v36  ;;  %3380 = vmatprep.subr.bf16.mxu0 %v5359_v37  ;;  %v5399_v36 = vld [vmem:[#allocation66_spill] sm:$0xff]  ;;  %v5402_v37 = vld [vmem:[#allocation73_spill] sm:$0xff] }
 0x26c   : > { %v5401_v58 = vld [vmem:[#allocation70_spill] sm:$0xff] }
 0x26e   : > { %3382 = vmatpush3.bf16.msra.mxu0 %v5360_v60 }
 0x26f   : > { %3416 = vmatprep.subr.bf16.mxu0 %v5361_v12 }
 0x271   : > { %1610 = vmatmul.mubr.f32.vlgmr.msra.gmra.mrb[12].mxu0 %v1541_v23 }
 0x272   : > { %3418 = vmatpush3.bf16.msra.mxu0 %v5362_v10  ;;  %1759 = vmatprep.mubr.f32.mxu0 %v1692_v55  ;;  %v1991_v55 = vrot.slane %v4994_v62, 7 }
 0x273   : > { %3420 = vmatprep.subr.bf16.mxu0 %v5363_v50 }
 0x276   : > { %3422 = vmatpush3.bf16.msra.mxu0 %v5364_v20 }
 0x277   : > { %3424 = vmatprep.subr.bf16.mxu0 %v5365_v47 }
 0x27a   : > { %3426 = vmatpush3.bf16.msra.mxu0 %v5366_v19 }
 0x27b   : > { %3428 = vmatprep.subr.bf16.mxu0 %v5367_v32 }
 0x27e   : > { %3430 = vmatpush3.bf16.msra.mxu0 %v5368_v9 }
 0x27f   : > { %3432 = vmatprep.subr.bf16.mxu0 %v5369_v46 }
 0x282   : > { %3434 = vmatpush3.bf16.msra.mxu0 %v5370_v30 }
 0x283   : > { %3436 = vmatprep.subr.bf16.mxu0 %v5371_v31 }
 0x286   : > { %3438 = vmatpush3.bf16.msra.mxu0 %v5372_v24 }
 0x287   : > { %3440 = vmatprep.subr.bf16.mxu0 %v5373_v48 }
 0x289   : > { %v2836_v54 = vpop.f32.mrb[12].mxu1 }
 0x28a   : > { %3442 = vmatpush3.bf16.msra.mxu0 %v5374_v52  ;;  %v2837_v44 = vpop.f32.mrb[13].mxu1 }
 0x28b   : > { %v2838_v28 = vadd.f32 %v2837_v44, %v2836_v54  ;;  %3444 = vmatprep.subr.bf16.mxu0 %v5375_v8 }
 0x28e   : > { %3446 = vmatpush3.bf16.msra.mxu0 %v5376_v57 }
 0x28f   : > { %3480 = vmatprep.subr.bf16.mxu0 %v5377_v35 }
 0x291   : > { %1760 = vmatmul.mubr.f32.vlgmr.msra.gmra.mrb[14].mxu0 %v1691_v21 }
 0x292   : > { %3482 = vmatpush3.bf16.msra.mxu0 %v5378_v13  ;;  %1909 = vmatprep.mubr.f32.mxu0 %v1842_v11 }
 0x293   : > { %3484 = vmatprep.subr.bf16.mxu0 %v5379_v40 }
 0x296   : > { %3486 = vmatpush3.bf16.msra.mxu0 %v5380_v3 }
 0x297   : > { %3488 = vmatprep.subr.bf16.mxu0 %v5381_v34 }
 0x29a   : > { %3490 = vmatpush3.bf16.msra.mxu0 %v5382_v45 }
 0x29b   : > { %3492 = vmatprep.subr.bf16.mxu0 %v5383_v63 }
 0x29e   : > { %3494 = vmatpush3.bf16.msra.mxu0 %v5384_v1 }
 0x29f   : > { %3496 = vmatprep.subr.bf16.mxu0 %v5385_v4 }
 0x2a2   : > { %3498 = vmatpush3.bf16.msra.mxu0 %v5386_v14 }
 0x2a3   : > { %3500 = vmatprep.subr.bf16.mxu0 %v5387_v16 }
 0x2a6   : > { %3502 = vmatpush3.bf16.msra.mxu0 %v5388_v27 }
 0x2a7   : > { %3504 = vmatprep.subr.bf16.mxu0 %v5389_v29 }
 0x2a9   : > { %v2906_v39 = vpop.f32.mrb[14].mxu1 }
 0x2aa   : > { %3506 = vmatpush3.bf16.msra.mxu0 %v5390_v41  ;;  %v2907_v51 = vpop.f32.mrb[15].mxu1 }
 0x2ab   : > { %v2908_v53 = vadd.f32 %v2907_v51, %v2906_v39  ;;  %3508 = vmatprep.subr.bf16.mxu0 %v5391_v61 }
 0x2ae   : > { %3510 = vmatpush3.bf16.msra.mxu0 %v5392_v0 }
 0x2af   : > { %3544 = vmatprep.subr.bf16.mxu0 %v5393_v22 }
 0x2b1   : > { %1910 = vmatmul.mubr.f32.vlgmr.msra.gmra.mrb[16].mxu0 %v1841_v7 }
 0x2b2   : > { %3546 = vmatpush3.bf16.msra.mxu0 %v5394_v38  ;;  %2059 = vmatprep.mubr.f32.mxu0 %v1992_v25 }
 0x2b3   : > { %3548 = vmatprep.subr.bf16.mxu0 %v5395_v56 }
 0x2b6   : > { %3550 = vmatpush3.bf16.msra.mxu0 %v5396_v5 }
 0x2b7   : > { %3552 = vmatprep.subr.bf16.mxu0 %v5397_v6 }
 0x2ba   : > { %3554 = vmatpush3.bf16.msra.mxu0 %v5398_v18 }
 0x2bb   : > { %3556 = vmatprep.subr.bf16.mxu0 %v5399_v36 }
 0x2be   : > { %3558 = vmatpush3.bf16.msra.mxu0 %v5400_v49 }
 0x2bf   : > { %3560 = vmatprep.subr.bf16.mxu0 %v5401_v58 }
 0x2c2   : > { %3562 = vmatpush3.bf16.msra.mxu0 %v5402_v37 }
 0x2c3   : > { %3564 = vmatprep.subr.bf16.mxu0 %v5403_v42 }
 0x2c6   : > { %3566 = vmatpush3.bf16.msra.mxu0 %v4914_v33  ;;  %v1538_v33 = vadd.f32 %v5089_v26, %v5062_v59  ;;  %v1393_v26 = vld [vmem:[%s5177_s6] sm:$0x1] }
 0x2c7   : > { %3568 = vmatprep.subr.bf16.mxu0 %v4923_v17 }
 0x2c9   : > { %v2976_v60 = vpop.f32.mrb[16].mxu1 }
 0x2ca   : > { %3570 = vmatpush3.bf16.msra.mxu0 %v4950_v43  ;;  %v2977_v23 = vpop.f32.mrb[17].mxu1 }
 0x2cb   : > { %v2978_v12 = vadd.f32 %v2977_v23, %v2976_v60  ;;  %3572 = vmatprep.subr.bf16.mxu0 %v4953_v15 }
 0x2ce   : > { %3574 = vmatpush3.bf16.msra.mxu0 %v4966_v2 }
 0x2d1   : > { %2060 = vmatmul.mubr.f32.vlgmr.msra.gmra.mrb[18].mxu0 %v1991_v55 }
 0x324   : > { %v1464_v10 = vpop.f32.mrb[10].mxu0 }
 0x325   : > { %v3029_v50 = vpop.f32.mrb[11].mxu0  ;;  %v1465_v35 = vadd.f32 %v1464_v10, %v1393_v26 }
 0x344   : > { %v2801_v20 = vpop.f32.mrb[12].mxu0 }
 0x345   : > { %v2802_v47 = vpop.f32.mrb[13].mxu0 }
 0x346   : > { %v2803_v17 = vadd.f32 %v2802_v47, %v2801_v20 }
 0x348   : > { %v1615_v19 = vadd.f32 %v2803_v17, %v1538_v33 }
 0x34a   : > { %v1690_v32 = vadd.f32 %v2838_v28, %v1615_v19 }
 0x364   : > { %v2871_v43 = vpop.f32.mrb[14].mxu0 }
 0x365   : > { %v2872_v9 = vpop.f32.mrb[15].mxu0 }
 0x366   : > { %v2873_v15 = vadd.f32 %v2872_v9, %v2871_v43 }
 0x368   : > { %v1765_v46 = vadd.f32 %v2873_v15, %v1690_v32 }
 0x36a   : > { %v1840_v2 = vadd.f32 %v2908_v53, %v1765_v46 }
 0x384   : > { %v2941_v30 = vpop.f32.mrb[16].mxu0 }
 0x385   : > { %v2942_v62 = vpop.f32.mrb[17].mxu0 }
 0x386   : > { %v2943_v31 = vadd.f32 %v2942_v62, %v2941_v30 }
 0x388   : > { %v1915_v24 = vadd.f32 %v2943_v31, %v1840_v2 }
 0x38a   : > { %v1990_v48 = vadd.f32 %v2978_v12, %v1915_v24 }
 0x3a4   : > { %v3011_v54 = vpop.f32.mrb[18].mxu0 }
 0x3a5   : > { %v3012_v52 = vpop.f32.mrb[19].mxu0 }
 0x3a6   : > { %v3013_v44 = vadd.f32 %v3012_v52, %v3011_v54 }
 0x3a8   : > { %v2065_v8 = vadd.f32 %v3013_v44, %v1990_v48 }
 0x3aa   : > { %v2066_v59 = vmax.f32 %v2065_v8, 0.0 }
 0x3ac   : > { %3039 = vmatmul.mubr.msk.f32.vlgmr.msra.gmra.mrb[18].mxu1 %vm1394_vm3, %v2066_v59 }
 0x47f   : > { %v2136_v28 = vpop.f32.mrb[18].mxu1 }
 0x480   : > { %v2137_v57 = vadd.f32 %v2136_v28, %v1393_v26  ;;  %v3040_v21 = vpop.f32.mrb[19].mxu1 }
 0x482   : > { %v2141_v11 = vrot.slane %v2137_v57, 7 }
 0x484   : > { %v2144_v13 = vsel %vm2143_vm4, %v1465_v35, %v2141_v11 }
 0x485   : > { %2146 = vst.msk [vmem:[%s335_s11] sm:$0x3] %vm2145_vm5, %v2144_v13 }
 0x486 PF: > { %p14_p9 = scmp.ge.s32.totalorder %s3697_s28, 4   ;;  %s5404_s24 = smov %s3630_s25 }
 0x487   : > { %s5405_s25 = smov %s3706_s8  ;;  %s5406_s26 = smov %s3697_s28 }
 0x488   :  { %16 = sbr.rel (!%p14_p9) target bundleno = 2 (0x2), region = 113 }

</bundles_post_ra>
